<compile_context>
chip_gen: v5e
topology: v5e:2x2
jax: 0.10.0
libtpu: 0.0.40
codegen_flags: <defaults>
</compile_context>

<pallas_src>
import math
import numpy as np
import jax
import jax.numpy as jnp
from jax.experimental import pallas as pl
from jax.experimental.pallas import tpu as pltpu

VOCAB = 21
D_MODEL = 64
D_K = 64
D_V = 64
N_HEADS = 8
D_FF = 512
NEG_INF = -1.0e9          # matches masked_fill_(-1000000000.0)
LN_EPS = 1e-5             # fresh nn.LayerNorm each forward: eps=1e-5, gamma=1, beta=0


def _layer_norm(x, eps=LN_EPS):
    mean = jnp.mean(x, axis=-1, keepdims=True)
    var = jnp.mean((x - mean) ** 2, axis=-1, keepdims=True)   # biased var (PyTorch LN)
    return (x - mean) * jax.lax.rsqrt(var + eps)


def _encoder_layer_kernel(x_ref, pad_ref, wqkv_ref, wo_ref, w1_ref, w2_ref,
                          out_ref, attn_ref, ctx_ref):
    # x_ref:    (R, D) f32, R = BB*S rows of this batch block
    # pad_ref:  (BB, 1, S) f32 (nonzero -> key position is PAD)
    # wqkv_ref: (D, 3*H*D_K) bf16 (Q columns pre-scaled by 1/sqrt(d_k))
    # wo_ref:   (H*D_V, D) bf16
    # w1_ref:   (D, D_FF) bf16      w2_ref:   (D_FF, D) bf16
    # out_ref:  (R, D) f32          attn_ref: (BB, H, S, S) f32
    # ctx_ref:  (R, H*D_V) bf16 VMEM scratch (per-head contexts, packed head-major)
    R, D = x_ref.shape
    BB, _, S = pad_ref.shape

    xf = x_ref[...]                              # f32, kept for residual / LayerNorm
    xb = xf.astype(jnp.bfloat16)

    # one fused QKV projection on the MXU (bf16 operands, f32 accumulation)
    qkv = jnp.dot(xb, wqkv_ref[...], preferred_element_type=jnp.float32)
    HD = N_HEADS * D_K
    q = qkv[:, 0 * HD:1 * HD]                    # already scaled by 1/sqrt(d_k)
    k = qkv[:, 1 * HD:2 * HD]
    v = qkv[:, 2 * HD:3 * HD]

    pad_key = pad_ref[...] != 0.0                # (BB, 1, S) bool, broadcasts over queries

    for h in range(N_HEADS):                     # static unroll over the 8 heads
        qh = q[:, h * D_K:(h + 1) * D_K].reshape(BB, S, D_K).astype(jnp.bfloat16)
        kh = k[:, h * D_K:(h + 1) * D_K].reshape(BB, S, D_K).astype(jnp.bfloat16)
        vh = v[:, h * D_V:(h + 1) * D_V].reshape(BB, S, D_V).astype(jnp.bfloat16)

        scores = jnp.einsum('bqd,bkd->bqk', qh, kh,
                            preferred_element_type=jnp.float32)      # (BB, S, S) f32
        scores = jnp.where(pad_key, NEG_INF, scores)                 # masked_fill_
        scores = scores - jnp.max(scores, axis=-1, keepdims=True)
        e = jnp.exp(scores)
        p = e / jnp.sum(e, axis=-1, keepdims=True)                   # exact softmax (f32)
        attn_ref[:, h, :, :] = p

        ctx = jnp.einsum('bqk,bkd->bqd', p.astype(jnp.bfloat16), vh,
                         preferred_element_type=jnp.float32)         # (BB, S, D_V)
        # pack this head's context at its static 64-column offset (head-major layout
        # matching wo's rows) -> enables the single fused output projection below
        ctx_ref[:, h * D_V:(h + 1) * D_V] = ctx.reshape(R, D_V).astype(jnp.bfloat16)

    # single K = H*D_V = 512 output projection (replaces 8 accumulating K=64 matmuls)
    mha = jnp.dot(ctx_ref[...], wo_ref[...], preferred_element_type=jnp.float32)
    y = _layer_norm(mha + xf)                    # residual + LayerNorm (f32)

    h1 = jnp.maximum(jnp.dot(y.astype(jnp.bfloat16), w1_ref[...],
                             preferred_element_type=jnp.float32), 0.0)
    ffn = jnp.dot(h1.astype(jnp.bfloat16), w2_ref[...],
                  preferred_element_type=jnp.float32)
    out_ref[...] = _layer_norm(ffn + y)          # residual + LayerNorm (f32)


def _pick_batch_block(B, S, batch_block):
    if batch_block is None:
        # >=2 "parallel" grid steps when the batch splits cleanly: feeds both v7x
        # TensorCores and overlaps block DMAs with compute; single step otherwise.
        if B % 2 == 0 and ((B // 2) * S) % 8 == 0:
            batch_block = B // 2
        else:
            batch_block = B
    assert B % batch_block == 0, "batch_block must divide the batch"
    # (8,128) sublane rule on the flattened-row BlockSpec (BB*S, D)
    assert (batch_block * S) % 8 == 0 or batch_block == B, \
        "batch_block*S must be a multiple of 8 (sublane rule) or cover the full batch"
    return batch_block


def encoder_layer_pallas(x2, pad3, wqkv, wo, w1, w2, *, B, S, batch_block=None):
    """x2: (B*S, D) f32 rows.  pad3: (B, 1, S) f32.  Weights are bf16."""
    D = D_MODEL
    H = N_HEADS
    BB = _pick_batch_block(B, S, batch_block)
    R = BB * S

    # Rough per-step VMEM footprint (double-buffered blocks + scratch + intermediates).
    # Only raise the scoped limit when the defaults (16 MiB v5e / 32 MiB v6e,v7x) would
    # pinch; the (BB,H,S,S) attention block is the governor at large S (cap BB on v7x).
    est = 2 * (2 * R * D * 4 + BB * H * S * S * 4 + BB * S * 4
               + 2 * (D * 3 * H * D_K + H * D_V * D + 2 * D * D_FF)) \
        + R * H * D_V * 2 + R * (3 * H * D_K + D_FF) * 4
    cp = dict(dimension_semantics=("parallel",))
    if est > 12 * 2 ** 20:
        cp["vmem_limit_bytes"] = int(min(max(2 * est, 16 * 2 ** 20), 64 * 2 ** 20))

    return pl.pallas_call(
        _encoder_layer_kernel,
        out_shape=(
            jax.ShapeDtypeStruct((B * S, D), jnp.float32),
            jax.ShapeDtypeStruct((B, H, S, S), jnp.float32),
        ),
        grid=(B // BB,),
        in_specs=[
            pl.BlockSpec((R, D), lambda b: (b, 0)),
            pl.BlockSpec((BB, 1, S), lambda b: (b, 0, 0)),
            pl.BlockSpec((D, 3 * H * D_K), lambda b: (0, 0)),
            pl.BlockSpec((H * D_V, D), lambda b: (0, 0)),
            pl.BlockSpec((D, D_FF), lambda b: (0, 0)),
            pl.BlockSpec((D_FF, D), lambda b: (0, 0)),
        ],
        out_specs=(
            pl.BlockSpec((R, D), lambda b: (b, 0)),
            pl.BlockSpec((BB, H, S, S), lambda b: (b, 0, 0, 0)),
        ),
        scratch_shapes=[pltpu.VMEM((R, H * D_V), jnp.bfloat16)],
        compiler_params=pltpu.CompilerParams(**cp),
    )(x2, pad3, wqkv, wo, w1, w2)


def make_positional_encoding(max_len, d_model):
    position = np.arange(max_len, dtype=np.float32)[:, None]
    div_term = np.exp(np.arange(0, d_model, 2).astype(np.float32)
                      * (-math.log(10000.0) / d_model))
    pe = np.zeros((max_len, d_model), dtype=np.float32)
    pe[:, 0::2] = np.sin(position * div_term)
    pe[:, 1::2] = np.cos(position * div_term)
    return jnp.asarray(pe)


def init_params(key, pe_max_len=5000):
    ks = jax.random.split(key, 7)
    s = 0.05
    wq = jax.random.normal(ks[1], (D_MODEL, N_HEADS * D_K), jnp.float32) * s
    wk = jax.random.normal(ks[2], (D_MODEL, N_HEADS * D_K), jnp.float32) * s
    wv = jax.random.normal(ks[3], (D_MODEL, N_HEADS * D_V), jnp.float32) * s
    # fold the 1/sqrt(d_k) attention scale into the Q columns once (removes a per-step
    # (R, H*D_K) VPU multiply in the kernel; exact since 1/8 is a power of two)
    wq = wq * np.float32(1.0 / np.sqrt(D_K))
    return {
        "emb": jax.random.normal(ks[0], (VOCAB, D_MODEL), jnp.float32),
        # fused QKV weight, stored bf16 (MXU-native operands, half the weight DMA/VMEM)
        "wqkv": jnp.concatenate([wq, wk, wv], axis=1).astype(jnp.bfloat16),
        "wo": (jax.random.normal(ks[4], (N_HEADS * D_V, D_MODEL), jnp.float32) * s
               ).astype(jnp.bfloat16),
        "w1": (jax.random.normal(ks[5], (D_MODEL, D_FF), jnp.float32) * s
               ).astype(jnp.bfloat16),
        "w2": (jax.random.normal(ks[6], (D_FF, D_MODEL), jnp.float32) * s
               ).astype(jnp.bfloat16),
        "pe": make_positional_encoding(pe_max_len, D_MODEL),   # PyTorch max_len=5000
    }


def encoder_forward(enc_inputs, params, *, batch_block=None):
    """enc_inputs: [B, S] int32 tokens -> (enc_outputs [B,S,D], [attn [B,H,S,S]])."""
    B, S = enc_inputs.shape
    emb = params["emb"][enc_inputs]                     # [B, S, D] embedding gather (glue)
    # Faithful PyTorch quirk: the transpose(0,1) around PositionalEncoding makes pe be
    # indexed by the BATCH index:  out[b, s, :] = emb[b, s, :] + pe[b, :].
    assert B <= params["pe"].shape[0], "PE quirk requires B <= pe max_len"
    x = emb + params["pe"][:B][:, None, :]
    # TODO(synk): Dropout(p=0.1) in PositionalEncoding treated as identity (eval mode).
    pad3 = (enc_inputs == 0).astype(jnp.float32).reshape(B, 1, S)   # key-pad vector
    x2 = x.reshape(B * S, D_MODEL).astype(jnp.float32)  # flatten = wrapper layout plumbing
    out2, attn = encoder_layer_pallas(x2, pad3, params["wqkv"], params["wo"],
                                      params["w1"], params["w2"],
                                      B=B, S=S, batch_block=batch_block)
    return out2.reshape(B, S, D_MODEL), [attn]          # n_layers = 1


if __name__ == "__main__":
    key = jax.random.PRNGKey(0)
    pkey, ikey = jax.random.split(key)
    params = init_params(pkey)

    B, S = 2, 8
    enc_inputs = jax.random.randint(ikey, (B, S), 0, VOCAB, dtype=jnp.int32)
    enc_inputs = enc_inputs.at[:, -1].set(0)     # force pad tokens -> exercise the mask

    enc_out, attns = encoder_forward(enc_inputs, params)
    jax.block_until_ready(enc_out)
    jax.block_until_ready(attns[0])

    assert enc_out.shape == (B, S, D_MODEL)
    assert attns[0].shape == (B, N_HEADS, S, S)
    assert bool(jnp.all(jnp.isfinite(enc_out)))
    assert bool(jnp.all(jnp.isfinite(attns[0])))
    # softmax rows must sum to ~1
    assert bool(jnp.all(jnp.abs(jnp.sum(attns[0], axis=-1) - 1.0) < 1e-3))
    print("KERNEL_OK")
</pallas_src>

<mosaic_0001>
module attributes {stable_mosaic.version = 11 : i64} {
  func.func @_encoder_layer_kernel(%arg0: i32, %arg1: memref<8x64xf32, #tpu.memory_space<vmem>>, %arg2: memref<1x1x8xf32, #tpu.memory_space<vmem>>, %arg3: memref<64x1536xbf16, #tpu.memory_space<vmem>>, %arg4: memref<512x64xbf16, #tpu.memory_space<vmem>>, %arg5: memref<64x512xbf16, #tpu.memory_space<vmem>>, %arg6: memref<512x64xbf16, #tpu.memory_space<vmem>>, %arg7: memref<8x64xf32, #tpu.memory_space<vmem>>, %arg8: memref<1x8x8x8xf32, #tpu.memory_space<vmem>>, %arg9: memref<8x512xbf16, #tpu.memory_space<vmem>>) attributes {dimension_semantics = [#tpu.dimension_semantics<parallel>], iteration_bounds = array<i64: 2>, scalar_prefetch = 0 : i64, scratch_operands = 1 : i64, tpu.core_type = #tpu.core_type<tc>, window_params = [{transform_indices = @transform_0, window_bounds = array<i64: 8, 64>}, {transform_indices = @transform_1, window_bounds = array<i64: 1, 1, 8>}, {pipeline_mode = #tpu.pipeline_mode<synchronous>, transform_indices = @transform_2, window_bounds = array<i64: 64, 1536>}, {pipeline_mode = #tpu.pipeline_mode<synchronous>, transform_indices = @transform_3, window_bounds = array<i64: 512, 64>}, {pipeline_mode = #tpu.pipeline_mode<synchronous>, transform_indices = @transform_4, window_bounds = array<i64: 64, 512>}, {pipeline_mode = #tpu.pipeline_mode<synchronous>, transform_indices = @transform_5, window_bounds = array<i64: 512, 64>}, {transform_indices = @transform_6, window_bounds = array<i64: 8, 64>}, {transform_indices = @transform_7, window_bounds = array<i64: 1, 8, 8, 8>}]} {
    %c0 = arith.constant 0 : index
    %c0_0 = arith.constant 0 : index
    %0 = vector.load %arg1[%c0, %c0_0] : memref<8x64xf32, #tpu.memory_space<vmem>>, vector<8x64xf32>
    %1 = arith.truncf %0 : vector<8x64xf32> to vector<8x64xbf16>
    %c0_1 = arith.constant 0 : index
    %c0_2 = arith.constant 0 : index
    %2 = vector.load %arg3[%c0_1, %c0_2] : memref<64x1536xbf16, #tpu.memory_space<vmem>>, vector<64x1536xbf16>
    %cst = arith.constant dense<0.000000e+00> : vector<8x1536xf32>
    %3 = tpu.matmul %1, %2, %cst {dimension_numbers = #tpu.dot_dimension_numbers<[1], [0], [0], [1], [0, 0, 1, 1], [], []>} : vector<8x64xbf16>, vector<64x1536xbf16>, vector<8x1536xf32> -> vector<8x1536xf32>
    %4 = vector.extract_strided_slice %3 {offsets = [0, 0], sizes = [8, 512], strides = [1, 1]} : vector<8x1536xf32> to vector<8x512xf32>
    %5 = vector.extract_strided_slice %3 {offsets = [0, 512], sizes = [8, 512], strides = [1, 1]} : vector<8x1536xf32> to vector<8x512xf32>
    %6 = vector.extract_strided_slice %3 {offsets = [0, 1024], sizes = [8, 512], strides = [1, 1]} : vector<8x1536xf32> to vector<8x512xf32>
    %c0_3 = arith.constant 0 : index
    %c0_4 = arith.constant 0 : index
    %c0_5 = arith.constant 0 : index
    %7 = vector.load %arg2[%c0_3, %c0_4, %c0_5] : memref<1x1x8xf32, #tpu.memory_space<vmem>>, vector<1x1x8xf32>
    %cst_6 = arith.constant 0.000000e+00 : f32
    %8 = vector.broadcast %cst_6 : f32 to vector<1x1x8xf32>
    %9 = arith.cmpf one, %7, %8 : vector<1x1x8xf32>
    %10 = vector.extract_strided_slice %4 {offsets = [0, 0], sizes = [8, 64], strides = [1, 1]} : vector<8x512xf32> to vector<8x64xf32>
    %11 = vector.shape_cast %10 : vector<8x64xf32> to vector<1x8x64xf32>
    %12 = arith.truncf %11 : vector<1x8x64xf32> to vector<1x8x64xbf16>
    %13 = vector.extract_strided_slice %5 {offsets = [0, 0], sizes = [8, 64], strides = [1, 1]} : vector<8x512xf32> to vector<8x64xf32>
    %14 = vector.shape_cast %13 : vector<8x64xf32> to vector<1x8x64xf32>
    %15 = arith.truncf %14 : vector<1x8x64xf32> to vector<1x8x64xbf16>
    %16 = vector.extract_strided_slice %6 {offsets = [0, 0], sizes = [8, 64], strides = [1, 1]} : vector<8x512xf32> to vector<8x64xf32>
    %17 = vector.shape_cast %16 : vector<8x64xf32> to vector<1x8x64xf32>
    %18 = arith.truncf %17 : vector<1x8x64xf32> to vector<1x8x64xbf16>
    "tpu.trace_start"() <{level = 10 : i32, message = "bqd,bkd->bqk"}> : () -> ()
    %cst_7 = arith.constant dense<0.000000e+00> : vector<1x8x8xf32>
    %19 = tpu.matmul %12, %15, %cst_7 {dimension_numbers = #tpu.dot_dimension_numbers<[2], [2], [1], [1], [0, 0, 0, 1, 1, 1], [0], [0]>} : vector<1x8x64xbf16>, vector<1x8x64xbf16>, vector<1x8x8xf32> -> vector<1x8x8xf32>
    %cst_8 = arith.constant -1.000000e+09 : f32
    "tpu.trace_stop"() : () -> ()
    %20 = vector.shape_cast %9 : vector<1x1x8xi1> to vector<1x1x8xi1>
    %21 = vector.broadcast %20 : vector<1x1x8xi1> to vector<1x8x8xi1>
    %22 = vector.broadcast %cst_8 : f32 to vector<1x8x8xf32>
    %23 = arith.select %21, %22, %19 : vector<1x8x8xi1>, vector<1x8x8xf32>
    %cst_9 = arith.constant dense<0xFF800000> : vector<1x8xf32>
    %24 = vector.multi_reduction <maximumf>, %23, %cst_9 [2] : vector<1x8x8xf32> to vector<1x8xf32>
    %25 = vector.shape_cast %24 : vector<1x8xf32> to vector<1x8x1xf32>
    %26 = vector.broadcast %25 : vector<1x8x1xf32> to vector<1x8x8xf32>
    %27 = arith.subf %23, %26 : vector<1x8x8xf32>
    %28 = math.exp %27 : vector<1x8x8xf32>
    %cst_10 = arith.constant dense<0.000000e+00> : vector<1x8xf32>
    %29 = vector.multi_reduction <add>, %28, %cst_10 [2] : vector<1x8x8xf32> to vector<1x8xf32>
    %30 = vector.shape_cast %29 : vector<1x8xf32> to vector<1x8x1xf32>
    %31 = vector.broadcast %30 : vector<1x8x1xf32> to vector<1x8x8xf32>
    %32 = arith.divf %28, %31 : vector<1x8x8xf32>
    %c0_11 = arith.constant 0 : index
    %c0_12 = arith.constant 0 : index
    %c0_13 = arith.constant 0 : index
    %c0_14 = arith.constant 0 : index
    %33 = vector.load %arg8[%c0_11, %c0_12, %c0_13, %c0_14] : memref<1x8x8x8xf32, #tpu.memory_space<vmem>>, vector<1x1x8x8xf32>
    %34 = vector.shape_cast %33 : vector<1x1x8x8xf32> to vector<1x8x8xf32>
    %35 = vector.shape_cast %32 : vector<1x8x8xf32> to vector<1x1x8x8xf32>
    tpu.vector_store %arg8[%c0_11, %c0_12, %c0_13, %c0_14], %35 {strides = array<i32>} : memref<1x8x8x8xf32, #tpu.memory_space<vmem>>, vector<1x1x8x8xf32>,
    %36 = arith.truncf %32 : vector<1x8x8xf32> to vector<1x8x8xbf16>
    "tpu.trace_start"() <{level = 10 : i32, message = "bqk,bkd->bqd"}> : () -> ()
    %cst_15 = arith.constant dense<0.000000e+00> : vector<1x8x64xf32>
    %37 = tpu.matmul %36, %18, %cst_15 {dimension_numbers = #tpu.dot_dimension_numbers<[2], [1], [1], [2], [0, 0, 0, 1, 1, 2], [0], [0]>} : vector<1x8x8xbf16>, vector<1x8x64xbf16>, vector<1x8x64xf32> -> vector<1x8x64xf32>
    "tpu.trace_stop"() : () -> ()
    %38 = vector.shape_cast %37 : vector<1x8x64xf32> to vector<8x64xf32>
    %39 = arith.truncf %38 : vector<8x64xf32> to vector<8x64xbf16>
    %c0_16 = arith.constant 0 : index
    %c0_17 = arith.constant 0 : index
    %40 = vector.load %arg9[%c0_16, %c0_17] : memref<8x512xbf16, #tpu.memory_space<vmem>>, vector<8x64xbf16>
    tpu.vector_store %arg9[%c0_16, %c0_17], %39 {strides = array<i32>} : memref<8x512xbf16, #tpu.memory_space<vmem>>, vector<8x64xbf16>,
    %41 = vector.extract_strided_slice %4 {offsets = [0, 64], sizes = [8, 64], strides = [1, 1]} : vector<8x512xf32> to vector<8x64xf32>
    %42 = vector.shape_cast %41 : vector<8x64xf32> to vector<1x8x64xf32>
    %43 = arith.truncf %42 : vector<1x8x64xf32> to vector<1x8x64xbf16>
    %44 = vector.extract_strided_slice %5 {offsets = [0, 64], sizes = [8, 64], strides = [1, 1]} : vector<8x512xf32> to vector<8x64xf32>
    %45 = vector.shape_cast %44 : vector<8x64xf32> to vector<1x8x64xf32>
    %46 = arith.truncf %45 : vector<1x8x64xf32> to vector<1x8x64xbf16>
    %47 = vector.extract_strided_slice %6 {offsets = [0, 64], sizes = [8, 64], strides = [1, 1]} : vector<8x512xf32> to vector<8x64xf32>
    %48 = vector.shape_cast %47 : vector<8x64xf32> to vector<1x8x64xf32>
    %49 = arith.truncf %48 : vector<1x8x64xf32> to vector<1x8x64xbf16>
    "tpu.trace_start"() <{level = 10 : i32, message = "bqd,bkd->bqk"}> : () -> ()
    %cst_18 = arith.constant dense<0.000000e+00> : vector<1x8x8xf32>
    %50 = tpu.matmul %43, %46, %cst_18 {dimension_numbers = #tpu.dot_dimension_numbers<[2], [2], [1], [1], [0, 0, 0, 1, 1, 1], [0], [0]>} : vector<1x8x64xbf16>, vector<1x8x64xbf16>, vector<1x8x8xf32> -> vector<1x8x8xf32>
    %cst_19 = arith.constant -1.000000e+09 : f32
    "tpu.trace_stop"() : () -> ()
    %51 = vector.shape_cast %9 : vector<1x1x8xi1> to vector<1x1x8xi1>
    %52 = vector.broadcast %51 : vector<1x1x8xi1> to vector<1x8x8xi1>
    %53 = vector.broadcast %cst_19 : f32 to vector<1x8x8xf32>
    %54 = arith.select %52, %53, %50 : vector<1x8x8xi1>, vector<1x8x8xf32>
    %cst_20 = arith.constant dense<0xFF800000> : vector<1x8xf32>
    %55 = vector.multi_reduction <maximumf>, %54, %cst_20 [2] : vector<1x8x8xf32> to vector<1x8xf32>
    %56 = vector.shape_cast %55 : vector<1x8xf32> to vector<1x8x1xf32>
    %57 = vector.broadcast %56 : vector<1x8x1xf32> to vector<1x8x8xf32>
    %58 = arith.subf %54, %57 : vector<1x8x8xf32>
    %59 = math.exp %58 : vector<1x8x8xf32>
    %cst_21 = arith.constant dense<0.000000e+00> : vector<1x8xf32>
    %60 = vector.multi_reduction <add>, %59, %cst_21 [2] : vector<1x8x8xf32> to vector<1x8xf32>
    %61 = vector.shape_cast %60 : vector<1x8xf32> to vector<1x8x1xf32>
    %62 = vector.broadcast %61 : vector<1x8x1xf32> to vector<1x8x8xf32>
    %63 = arith.divf %59, %62 : vector<1x8x8xf32>
    %c0_22 = arith.constant 0 : index
    %c1 = arith.constant 1 : index
    %c0_23 = arith.constant 0 : index
    %c0_24 = arith.constant 0 : index
    %64 = vector.load %arg8[%c0_22, %c1, %c0_23, %c0_24] : memref<1x8x8x8xf32, #tpu.memory_space<vmem>>, vector<1x1x8x8xf32>
    %65 = vector.shape_cast %64 : vector<1x1x8x8xf32> to vector<1x8x8xf32>
    %66 = vector.shape_cast %63 : vector<1x8x8xf32> to vector<1x1x8x8xf32>
    tpu.vector_store %arg8[%c0_22, %c1, %c0_23, %c0_24], %66 {strides = array<i32>} : memref<1x8x8x8xf32, #tpu.memory_space<vmem>>, vector<1x1x8x8xf32>,
    %67 = arith.truncf %63 : vector<1x8x8xf32> to vector<1x8x8xbf16>
    "tpu.trace_start"() <{level = 10 : i32, message = "bqk,bkd->bqd"}> : () -> ()
    %cst_25 = arith.constant dense<0.000000e+00> : vector<1x8x64xf32>
    %68 = tpu.matmul %67, %49, %cst_25 {dimension_numbers = #tpu.dot_dimension_numbers<[2], [1], [1], [2], [0, 0, 0, 1, 1, 2], [0], [0]>} : vector<1x8x8xbf16>, vector<1x8x64xbf16>, vector<1x8x64xf32> -> vector<1x8x64xf32>
    "tpu.trace_stop"() : () -> ()
    %69 = vector.shape_cast %68 : vector<1x8x64xf32> to vector<8x64xf32>
    %70 = arith.truncf %69 : vector<8x64xf32> to vector<8x64xbf16>
    %c0_26 = arith.constant 0 : index
    %c64 = arith.constant 64 : index
    %71 = vector.load %arg9[%c0_26, %c64] : memref<8x512xbf16, #tpu.memory_space<vmem>>, vector<8x64xbf16>
    tpu.vector_store %arg9[%c0_26, %c64], %70 {strides = array<i32>} : memref<8x512xbf16, #tpu.memory_space<vmem>>, vector<8x64xbf16>,
    %72 = vector.extract_strided_slice %4 {offsets = [0, 128], sizes = [8, 64], strides = [1, 1]} : vector<8x512xf32> to vector<8x64xf32>
    %73 = vector.shape_cast %72 : vector<8x64xf32> to vector<1x8x64xf32>
    %74 = arith.truncf %73 : vector<1x8x64xf32> to vector<1x8x64xbf16>
    %75 = vector.extract_strided_slice %5 {offsets = [0, 128], sizes = [8, 64], strides = [1, 1]} : vector<8x512xf32> to vector<8x64xf32>
    %76 = vector.shape_cast %75 : vector<8x64xf32> to vector<1x8x64xf32>
    %77 = arith.truncf %76 : vector<1x8x64xf32> to vector<1x8x64xbf16>
    %78 = vector.extract_strided_slice %6 {offsets = [0, 128], sizes = [8, 64], strides = [1, 1]} : vector<8x512xf32> to vector<8x64xf32>
    %79 = vector.shape_cast %78 : vector<8x64xf32> to vector<1x8x64xf32>
    %80 = arith.truncf %79 : vector<1x8x64xf32> to vector<1x8x64xbf16>
    "tpu.trace_start"() <{level = 10 : i32, message = "bqd,bkd->bqk"}> : () -> ()
    %cst_27 = arith.constant dense<0.000000e+00> : vector<1x8x8xf32>
    %81 = tpu.matmul %74, %77, %cst_27 {dimension_numbers = #tpu.dot_dimension_numbers<[2], [2], [1], [1], [0, 0, 0, 1, 1, 1], [0], [0]>} : vector<1x8x64xbf16>, vector<1x8x64xbf16>, vector<1x8x8xf32> -> vector<1x8x8xf32>
    %cst_28 = arith.constant -1.000000e+09 : f32
    "tpu.trace_stop"() : () -> ()
    %82 = vector.shape_cast %9 : vector<1x1x8xi1> to vector<1x1x8xi1>
    %83 = vector.broadcast %82 : vector<1x1x8xi1> to vector<1x8x8xi1>
    %84 = vector.broadcast %cst_28 : f32 to vector<1x8x8xf32>
    %85 = arith.select %83, %84, %81 : vector<1x8x8xi1>, vector<1x8x8xf32>
    %cst_29 = arith.constant dense<0xFF800000> : vector<1x8xf32>
    %86 = vector.multi_reduction <maximumf>, %85, %cst_29 [2] : vector<1x8x8xf32> to vector<1x8xf32>
    %87 = vector.shape_cast %86 : vector<1x8xf32> to vector<1x8x1xf32>
    %88 = vector.broadcast %87 : vector<1x8x1xf32> to vector<1x8x8xf32>
    %89 = arith.subf %85, %88 : vector<1x8x8xf32>
    %90 = math.exp %89 : vector<1x8x8xf32>
    %cst_30 = arith.constant dense<0.000000e+00> : vector<1x8xf32>
    %91 = vector.multi_reduction <add>, %90, %cst_30 [2] : vector<1x8x8xf32> to vector<1x8xf32>
    %92 = vector.shape_cast %91 : vector<1x8xf32> to vector<1x8x1xf32>
    %93 = vector.broadcast %92 : vector<1x8x1xf32> to vector<1x8x8xf32>
    %94 = arith.divf %90, %93 : vector<1x8x8xf32>
    %c0_31 = arith.constant 0 : index
    %c2 = arith.constant 2 : index
    %c0_32 = arith.constant 0 : index
    %c0_33 = arith.constant 0 : index
    %95 = vector.load %arg8[%c0_31, %c2, %c0_32, %c0_33] : memref<1x8x8x8xf32, #tpu.memory_space<vmem>>, vector<1x1x8x8xf32>
    %96 = vector.shape_cast %95 : vector<1x1x8x8xf32> to vector<1x8x8xf32>
    %97 = vector.shape_cast %94 : vector<1x8x8xf32> to vector<1x1x8x8xf32>
    tpu.vector_store %arg8[%c0_31, %c2, %c0_32, %c0_33], %97 {strides = array<i32>} : memref<1x8x8x8xf32, #tpu.memory_space<vmem>>, vector<1x1x8x8xf32>,
    %98 = arith.truncf %94 : vector<1x8x8xf32> to vector<1x8x8xbf16>
    "tpu.trace_start"() <{level = 10 : i32, message = "bqk,bkd->bqd"}> : () -> ()
    %cst_34 = arith.constant dense<0.000000e+00> : vector<1x8x64xf32>
    %99 = tpu.matmul %98, %80, %cst_34 {dimension_numbers = #tpu.dot_dimension_numbers<[2], [1], [1], [2], [0, 0, 0, 1, 1, 2], [0], [0]>} : vector<1x8x8xbf16>, vector<1x8x64xbf16>, vector<1x8x64xf32> -> vector<1x8x64xf32>
    "tpu.trace_stop"() : () -> ()
    %100 = vector.shape_cast %99 : vector<1x8x64xf32> to vector<8x64xf32>
    %101 = arith.truncf %100 : vector<8x64xf32> to vector<8x64xbf16>
    %c0_35 = arith.constant 0 : index
    %c128 = arith.constant 128 : index
    %102 = vector.load %arg9[%c0_35, %c128] : memref<8x512xbf16, #tpu.memory_space<vmem>>, vector<8x64xbf16>
    tpu.vector_store %arg9[%c0_35, %c128], %101 {strides = array<i32>} : memref<8x512xbf16, #tpu.memory_space<vmem>>, vector<8x64xbf16>,
    %103 = vector.extract_strided_slice %4 {offsets = [0, 192], sizes = [8, 64], strides = [1, 1]} : vector<8x512xf32> to vector<8x64xf32>
    %104 = vector.shape_cast %103 : vector<8x64xf32> to vector<1x8x64xf32>
    %105 = arith.truncf %104 : vector<1x8x64xf32> to vector<1x8x64xbf16>
    %106 = vector.extract_strided_slice %5 {offsets = [0, 192], sizes = [8, 64], strides = [1, 1]} : vector<8x512xf32> to vector<8x64xf32>
    %107 = vector.shape_cast %106 : vector<8x64xf32> to vector<1x8x64xf32>
    %108 = arith.truncf %107 : vector<1x8x64xf32> to vector<1x8x64xbf16>
    %109 = vector.extract_strided_slice %6 {offsets = [0, 192], sizes = [8, 64], strides = [1, 1]} : vector<8x512xf32> to vector<8x64xf32>
    %110 = vector.shape_cast %109 : vector<8x64xf32> to vector<1x8x64xf32>
    %111 = arith.truncf %110 : vector<1x8x64xf32> to vector<1x8x64xbf16>
    "tpu.trace_start"() <{level = 10 : i32, message = "bqd,bkd->bqk"}> : () -> ()
    %cst_36 = arith.constant dense<0.000000e+00> : vector<1x8x8xf32>
    %112 = tpu.matmul %105, %108, %cst_36 {dimension_numbers = #tpu.dot_dimension_numbers<[2], [2], [1], [1], [0, 0, 0, 1, 1, 1], [0], [0]>} : vector<1x8x64xbf16>, vector<1x8x64xbf16>, vector<1x8x8xf32> -> vector<1x8x8xf32>
    %cst_37 = arith.constant -1.000000e+09 : f32
    "tpu.trace_stop"() : () -> ()
    %113 = vector.shape_cast %9 : vector<1x1x8xi1> to vector<1x1x8xi1>
    %114 = vector.broadcast %113 : vector<1x1x8xi1> to vector<1x8x8xi1>
    %115 = vector.broadcast %cst_37 : f32 to vector<1x8x8xf32>
    %116 = arith.select %114, %115, %112 : vector<1x8x8xi1>, vector<1x8x8xf32>
    %cst_38 = arith.constant dense<0xFF800000> : vector<1x8xf32>
    %117 = vector.multi_reduction <maximumf>, %116, %cst_38 [2] : vector<1x8x8xf32> to vector<1x8xf32>
    %118 = vector.shape_cast %117 : vector<1x8xf32> to vector<1x8x1xf32>
    %119 = vector.broadcast %118 : vector<1x8x1xf32> to vector<1x8x8xf32>
    %120 = arith.subf %116, %119 : vector<1x8x8xf32>
    %121 = math.exp %120 : vector<1x8x8xf32>
    %cst_39 = arith.constant dense<0.000000e+00> : vector<1x8xf32>
    %122 = vector.multi_reduction <add>, %121, %cst_39 [2] : vector<1x8x8xf32> to vector<1x8xf32>
    %123 = vector.shape_cast %122 : vector<1x8xf32> to vector<1x8x1xf32>
    %124 = vector.broadcast %123 : vector<1x8x1xf32> to vector<1x8x8xf32>
    %125 = arith.divf %121, %124 : vector<1x8x8xf32>
    %c0_40 = arith.constant 0 : index
    %c3 = arith.constant 3 : index
    %c0_41 = arith.constant 0 : index
    %c0_42 = arith.constant 0 : index
    %126 = vector.load %arg8[%c0_40, %c3, %c0_41, %c0_42] : memref<1x8x8x8xf32, #tpu.memory_space<vmem>>, vector<1x1x8x8xf32>
    %127 = vector.shape_cast %126 : vector<1x1x8x8xf32> to vector<1x8x8xf32>
    %128 = vector.shape_cast %125 : vector<1x8x8xf32> to vector<1x1x8x8xf32>
    tpu.vector_store %arg8[%c0_40, %c3, %c0_41, %c0_42], %128 {strides = array<i32>} : memref<1x8x8x8xf32, #tpu.memory_space<vmem>>, vector<1x1x8x8xf32>,
    %129 = arith.truncf %125 : vector<1x8x8xf32> to vector<1x8x8xbf16>
    "tpu.trace_start"() <{level = 10 : i32, message = "bqk,bkd->bqd"}> : () -> ()
    %cst_43 = arith.constant dense<0.000000e+00> : vector<1x8x64xf32>
    %130 = tpu.matmul %129, %111, %cst_43 {dimension_numbers = #tpu.dot_dimension_numbers<[2], [1], [1], [2], [0, 0, 0, 1, 1, 2], [0], [0]>} : vector<1x8x8xbf16>, vector<1x8x64xbf16>, vector<1x8x64xf32> -> vector<1x8x64xf32>
    "tpu.trace_stop"() : () -> ()
    %131 = vector.shape_cast %130 : vector<1x8x64xf32> to vector<8x64xf32>
    %132 = arith.truncf %131 : vector<8x64xf32> to vector<8x64xbf16>
    %c0_44 = arith.constant 0 : index
    %c192 = arith.constant 192 : index
    %133 = vector.load %arg9[%c0_44, %c192] : memref<8x512xbf16, #tpu.memory_space<vmem>>, vector<8x64xbf16>
    tpu.vector_store %arg9[%c0_44, %c192], %132 {strides = array<i32>} : memref<8x512xbf16, #tpu.memory_space<vmem>>, vector<8x64xbf16>,
    %134 = vector.extract_strided_slice %4 {offsets = [0, 256], sizes = [8, 64], strides = [1, 1]} : vector<8x512xf32> to vector<8x64xf32>
    %135 = vector.shape_cast %134 : vector<8x64xf32> to vector<1x8x64xf32>
    %136 = arith.truncf %135 : vector<1x8x64xf32> to vector<1x8x64xbf16>
    %137 = vector.extract_strided_slice %5 {offsets = [0, 256], sizes = [8, 64], strides = [1, 1]} : vector<8x512xf32> to vector<8x64xf32>
    %138 = vector.shape_cast %137 : vector<8x64xf32> to vector<1x8x64xf32>
    %139 = arith.truncf %138 : vector<1x8x64xf32> to vector<1x8x64xbf16>
    %140 = vector.extract_strided_slice %6 {offsets = [0, 256], sizes = [8, 64], strides = [1, 1]} : vector<8x512xf32> to vector<8x64xf32>
    %141 = vector.shape_cast %140 : vector<8x64xf32> to vector<1x8x64xf32>
    %142 = arith.truncf %141 : vector<1x8x64xf32> to vector<1x8x64xbf16>
    "tpu.trace_start"() <{level = 10 : i32, message = "bqd,bkd->bqk"}> : () -> ()
    %cst_45 = arith.constant dense<0.000000e+00> : vector<1x8x8xf32>
    %143 = tpu.matmul %136, %139, %cst_45 {dimension_numbers = #tpu.dot_dimension_numbers<[2], [2], [1], [1], [0, 0, 0, 1, 1, 1], [0], [0]>} : vector<1x8x64xbf16>, vector<1x8x64xbf16>, vector<1x8x8xf32> -> vector<1x8x8xf32>
    %cst_46 = arith.constant -1.000000e+09 : f32
    "tpu.trace_stop"() : () -> ()
    %144 = vector.shape_cast %9 : vector<1x1x8xi1> to vector<1x1x8xi1>
    %145 = vector.broadcast %144 : vector<1x1x8xi1> to vector<1x8x8xi1>
    %146 = vector.broadcast %cst_46 : f32 to vector<1x8x8xf32>
    %147 = arith.select %145, %146, %143 : vector<1x8x8xi1>, vector<1x8x8xf32>
    %cst_47 = arith.constant dense<0xFF800000> : vector<1x8xf32>
    %148 = vector.multi_reduction <maximumf>, %147, %cst_47 [2] : vector<1x8x8xf32> to vector<1x8xf32>
    %149 = vector.shape_cast %148 : vector<1x8xf32> to vector<1x8x1xf32>
    %150 = vector.broadcast %149 : vector<1x8x1xf32> to vector<1x8x8xf32>
    %151 = arith.subf %147, %150 : vector<1x8x8xf32>
    %152 = math.exp %151 : vector<1x8x8xf32>
    %cst_48 = arith.constant dense<0.000000e+00> : vector<1x8xf32>
    %153 = vector.multi_reduction <add>, %152, %cst_48 [2] : vector<1x8x8xf32> to vector<1x8xf32>
    %154 = vector.shape_cast %153 : vector<1x8xf32> to vector<1x8x1xf32>
    %155 = vector.broadcast %154 : vector<1x8x1xf32> to vector<1x8x8xf32>
    %156 = arith.divf %152, %155 : vector<1x8x8xf32>
    %c0_49 = arith.constant 0 : index
    %c4 = arith.constant 4 : index
    %c0_50 = arith.constant 0 : index
    %c0_51 = arith.constant 0 : index
    %157 = vector.load %arg8[%c0_49, %c4, %c0_50, %c0_51] : memref<1x8x8x8xf32, #tpu.memory_space<vmem>>, vector<1x1x8x8xf32>
    %158 = vector.shape_cast %157 : vector<1x1x8x8xf32> to vector<1x8x8xf32>
    %159 = vector.shape_cast %156 : vector<1x8x8xf32> to vector<1x1x8x8xf32>
    tpu.vector_store %arg8[%c0_49, %c4, %c0_50, %c0_51], %159 {strides = array<i32>} : memref<1x8x8x8xf32, #tpu.memory_space<vmem>>, vector<1x1x8x8xf32>,
    %160 = arith.truncf %156 : vector<1x8x8xf32> to vector<1x8x8xbf16>
    "tpu.trace_start"() <{level = 10 : i32, message = "bqk,bkd->bqd"}> : () -> ()
    %cst_52 = arith.constant dense<0.000000e+00> : vector<1x8x64xf32>
    %161 = tpu.matmul %160, %142, %cst_52 {dimension_numbers = #tpu.dot_dimension_numbers<[2], [1], [1], [2], [0, 0, 0, 1, 1, 2], [0], [0]>} : vector<1x8x8xbf16>, vector<1x8x64xbf16>, vector<1x8x64xf32> -> vector<1x8x64xf32>
    "tpu.trace_stop"() : () -> ()
    %162 = vector.shape_cast %161 : vector<1x8x64xf32> to vector<8x64xf32>
    %163 = arith.truncf %162 : vector<8x64xf32> to vector<8x64xbf16>
    %c0_53 = arith.constant 0 : index
    %c256 = arith.constant 256 : index
    %164 = vector.load %arg9[%c0_53, %c256] : memref<8x512xbf16, #tpu.memory_space<vmem>>, vector<8x64xbf16>
    tpu.vector_store %arg9[%c0_53, %c256], %163 {strides = array<i32>} : memref<8x512xbf16, #tpu.memory_space<vmem>>, vector<8x64xbf16>,
    %165 = vector.extract_strided_slice %4 {offsets = [0, 320], sizes = [8, 64], strides = [1, 1]} : vector<8x512xf32> to vector<8x64xf32>
    %166 = vector.shape_cast %165 : vector<8x64xf32> to vector<1x8x64xf32>
    %167 = arith.truncf %166 : vector<1x8x64xf32> to vector<1x8x64xbf16>
    %168 = vector.extract_strided_slice %5 {offsets = [0, 320], sizes = [8, 64], strides = [1, 1]} : vector<8x512xf32> to vector<8x64xf32>
    %169 = vector.shape_cast %168 : vector<8x64xf32> to vector<1x8x64xf32>
    %170 = arith.truncf %169 : vector<1x8x64xf32> to vector<1x8x64xbf16>
    %171 = vector.extract_strided_slice %6 {offsets = [0, 320], sizes = [8, 64], strides = [1, 1]} : vector<8x512xf32> to vector<8x64xf32>
    %172 = vector.shape_cast %171 : vector<8x64xf32> to vector<1x8x64xf32>
    %173 = arith.truncf %172 : vector<1x8x64xf32> to vector<1x8x64xbf16>
    "tpu.trace_start"() <{level = 10 : i32, message = "bqd,bkd->bqk"}> : () -> ()
    %cst_54 = arith.constant dense<0.000000e+00> : vector<1x8x8xf32>
    %174 = tpu.matmul %167, %170, %cst_54 {dimension_numbers = #tpu.dot_dimension_numbers<[2], [2], [1], [1], [0, 0, 0, 1, 1, 1], [0], [0]>} : vector<1x8x64xbf16>, vector<1x8x64xbf16>, vector<1x8x8xf32> -> vector<1x8x8xf32>
    %cst_55 = arith.constant -1.000000e+09 : f32
    "tpu.trace_stop"() : () -> ()
    %175 = vector.shape_cast %9 : vector<1x1x8xi1> to vector<1x1x8xi1>
    %176 = vector.broadcast %175 : vector<1x1x8xi1> to vector<1x8x8xi1>
    %177 = vector.broadcast %cst_55 : f32 to vector<1x8x8xf32>
    %178 = arith.select %176, %177, %174 : vector<1x8x8xi1>, vector<1x8x8xf32>
    %cst_56 = arith.constant dense<0xFF800000> : vector<1x8xf32>
    %179 = vector.multi_reduction <maximumf>, %178, %cst_56 [2] : vector<1x8x8xf32> to vector<1x8xf32>
    %180 = vector.shape_cast %179 : vector<1x8xf32> to vector<1x8x1xf32>
    %181 = vector.broadcast %180 : vector<1x8x1xf32> to vector<1x8x8xf32>
    %182 = arith.subf %178, %181 : vector<1x8x8xf32>
    %183 = math.exp %182 : vector<1x8x8xf32>
    %cst_57 = arith.constant dense<0.000000e+00> : vector<1x8xf32>
    %184 = vector.multi_reduction <add>, %183, %cst_57 [2] : vector<1x8x8xf32> to vector<1x8xf32>
    %185 = vector.shape_cast %184 : vector<1x8xf32> to vector<1x8x1xf32>
    %186 = vector.broadcast %185 : vector<1x8x1xf32> to vector<1x8x8xf32>
    %187 = arith.divf %183, %186 : vector<1x8x8xf32>
    %c0_58 = arith.constant 0 : index
    %c5 = arith.constant 5 : index
    %c0_59 = arith.constant 0 : index
    %c0_60 = arith.constant 0 : index
    %188 = vector.load %arg8[%c0_58, %c5, %c0_59, %c0_60] : memref<1x8x8x8xf32, #tpu.memory_space<vmem>>, vector<1x1x8x8xf32>
    %189 = vector.shape_cast %188 : vector<1x1x8x8xf32> to vector<1x8x8xf32>
    %190 = vector.shape_cast %187 : vector<1x8x8xf32> to vector<1x1x8x8xf32>
    tpu.vector_store %arg8[%c0_58, %c5, %c0_59, %c0_60], %190 {strides = array<i32>} : memref<1x8x8x8xf32, #tpu.memory_space<vmem>>, vector<1x1x8x8xf32>,
    %191 = arith.truncf %187 : vector<1x8x8xf32> to vector<1x8x8xbf16>
    "tpu.trace_start"() <{level = 10 : i32, message = "bqk,bkd->bqd"}> : () -> ()
    %cst_61 = arith.constant dense<0.000000e+00> : vector<1x8x64xf32>
    %192 = tpu.matmul %191, %173, %cst_61 {dimension_numbers = #tpu.dot_dimension_numbers<[2], [1], [1], [2], [0, 0, 0, 1, 1, 2], [0], [0]>} : vector<1x8x8xbf16>, vector<1x8x64xbf16>, vector<1x8x64xf32> -> vector<1x8x64xf32>
    "tpu.trace_stop"() : () -> ()
    %193 = vector.shape_cast %192 : vector<1x8x64xf32> to vector<8x64xf32>
    %194 = arith.truncf %193 : vector<8x64xf32> to vector<8x64xbf16>
    %c0_62 = arith.constant 0 : index
    %c320 = arith.constant 320 : index
    %195 = vector.load %arg9[%c0_62, %c320] : memref<8x512xbf16, #tpu.memory_space<vmem>>, vector<8x64xbf16>
    tpu.vector_store %arg9[%c0_62, %c320], %194 {strides = array<i32>} : memref<8x512xbf16, #tpu.memory_space<vmem>>, vector<8x64xbf16>,
    %196 = vector.extract_strided_slice %4 {offsets = [0, 384], sizes = [8, 64], strides = [1, 1]} : vector<8x512xf32> to vector<8x64xf32>
    %197 = vector.shape_cast %196 : vector<8x64xf32> to vector<1x8x64xf32>
    %198 = arith.truncf %197 : vector<1x8x64xf32> to vector<1x8x64xbf16>
    %199 = vector.extract_strided_slice %5 {offsets = [0, 384], sizes = [8, 64], strides = [1, 1]} : vector<8x512xf32> to vector<8x64xf32>
    %200 = vector.shape_cast %199 : vector<8x64xf32> to vector<1x8x64xf32>
    %201 = arith.truncf %200 : vector<1x8x64xf32> to vector<1x8x64xbf16>
    %202 = vector.extract_strided_slice %6 {offsets = [0, 384], sizes = [8, 64], strides = [1, 1]} : vector<8x512xf32> to vector<8x64xf32>
    %203 = vector.shape_cast %202 : vector<8x64xf32> to vector<1x8x64xf32>
    %204 = arith.truncf %203 : vector<1x8x64xf32> to vector<1x8x64xbf16>
    "tpu.trace_start"() <{level = 10 : i32, message = "bqd,bkd->bqk"}> : () -> ()
    %cst_63 = arith.constant dense<0.000000e+00> : vector<1x8x8xf32>
    %205 = tpu.matmul %198, %201, %cst_63 {dimension_numbers = #tpu.dot_dimension_numbers<[2], [2], [1], [1], [0, 0, 0, 1, 1, 1], [0], [0]>} : vector<1x8x64xbf16>, vector<1x8x64xbf16>, vector<1x8x8xf32> -> vector<1x8x8xf32>
    %cst_64 = arith.constant -1.000000e+09 : f32
    "tpu.trace_stop"() : () -> ()
    %206 = vector.shape_cast %9 : vector<1x1x8xi1> to vector<1x1x8xi1>
    %207 = vector.broadcast %206 : vector<1x1x8xi1> to vector<1x8x8xi1>
    %208 = vector.broadcast %cst_64 : f32 to vector<1x8x8xf32>
    %209 = arith.select %207, %208, %205 : vector<1x8x8xi1>, vector<1x8x8xf32>
    %cst_65 = arith.constant dense<0xFF800000> : vector<1x8xf32>
    %210 = vector.multi_reduction <maximumf>, %209, %cst_65 [2] : vector<1x8x8xf32> to vector<1x8xf32>
    %211 = vector.shape_cast %210 : vector<1x8xf32> to vector<1x8x1xf32>
    %212 = vector.broadcast %211 : vector<1x8x1xf32> to vector<1x8x8xf32>
    %213 = arith.subf %209, %212 : vector<1x8x8xf32>
    %214 = math.exp %213 : vector<1x8x8xf32>
    %cst_66 = arith.constant dense<0.000000e+00> : vector<1x8xf32>
    %215 = vector.multi_reduction <add>, %214, %cst_66 [2] : vector<1x8x8xf32> to vector<1x8xf32>
    %216 = vector.shape_cast %215 : vector<1x8xf32> to vector<1x8x1xf32>
    %217 = vector.broadcast %216 : vector<1x8x1xf32> to vector<1x8x8xf32>
    %218 = arith.divf %214, %217 : vector<1x8x8xf32>
    %c0_67 = arith.constant 0 : index
    %c6 = arith.constant 6 : index
    %c0_68 = arith.constant 0 : index
    %c0_69 = arith.constant 0 : index
    %219 = vector.load %arg8[%c0_67, %c6, %c0_68, %c0_69] : memref<1x8x8x8xf32, #tpu.memory_space<vmem>>, vector<1x1x8x8xf32>
    %220 = vector.shape_cast %219 : vector<1x1x8x8xf32> to vector<1x8x8xf32>
    %221 = vector.shape_cast %218 : vector<1x8x8xf32> to vector<1x1x8x8xf32>
    tpu.vector_store %arg8[%c0_67, %c6, %c0_68, %c0_69], %221 {strides = array<i32>} : memref<1x8x8x8xf32, #tpu.memory_space<vmem>>, vector<1x1x8x8xf32>,
    %222 = arith.truncf %218 : vector<1x8x8xf32> to vector<1x8x8xbf16>
    "tpu.trace_start"() <{level = 10 : i32, message = "bqk,bkd->bqd"}> : () -> ()
    %cst_70 = arith.constant dense<0.000000e+00> : vector<1x8x64xf32>
    %223 = tpu.matmul %222, %204, %cst_70 {dimension_numbers = #tpu.dot_dimension_numbers<[2], [1], [1], [2], [0, 0, 0, 1, 1, 2], [0], [0]>} : vector<1x8x8xbf16>, vector<1x8x64xbf16>, vector<1x8x64xf32> -> vector<1x8x64xf32>
    "tpu.trace_stop"() : () -> ()
    %224 = vector.shape_cast %223 : vector<1x8x64xf32> to vector<8x64xf32>
    %225 = arith.truncf %224 : vector<8x64xf32> to vector<8x64xbf16>
    %c0_71 = arith.constant 0 : index
    %c384 = arith.constant 384 : index
    %226 = vector.load %arg9[%c0_71, %c384] : memref<8x512xbf16, #tpu.memory_space<vmem>>, vector<8x64xbf16>
    tpu.vector_store %arg9[%c0_71, %c384], %225 {strides = array<i32>} : memref<8x512xbf16, #tpu.memory_space<vmem>>, vector<8x64xbf16>,
    %227 = vector.extract_strided_slice %4 {offsets = [0, 448], sizes = [8, 64], strides = [1, 1]} : vector<8x512xf32> to vector<8x64xf32>
    %228 = vector.shape_cast %227 : vector<8x64xf32> to vector<1x8x64xf32>
    %229 = arith.truncf %228 : vector<1x8x64xf32> to vector<1x8x64xbf16>
    %230 = vector.extract_strided_slice %5 {offsets = [0, 448], sizes = [8, 64], strides = [1, 1]} : vector<8x512xf32> to vector<8x64xf32>
    %231 = vector.shape_cast %230 : vector<8x64xf32> to vector<1x8x64xf32>
    %232 = arith.truncf %231 : vector<1x8x64xf32> to vector<1x8x64xbf16>
    %233 = vector.extract_strided_slice %6 {offsets = [0, 448], sizes = [8, 64], strides = [1, 1]} : vector<8x512xf32> to vector<8x64xf32>
    %234 = vector.shape_cast %233 : vector<8x64xf32> to vector<1x8x64xf32>
    %235 = arith.truncf %234 : vector<1x8x64xf32> to vector<1x8x64xbf16>
    "tpu.trace_start"() <{level = 10 : i32, message = "bqd,bkd->bqk"}> : () -> ()
    %cst_72 = arith.constant dense<0.000000e+00> : vector<1x8x8xf32>
    %236 = tpu.matmul %229, %232, %cst_72 {dimension_numbers = #tpu.dot_dimension_numbers<[2], [2], [1], [1], [0, 0, 0, 1, 1, 1], [0], [0]>} : vector<1x8x64xbf16>, vector<1x8x64xbf16>, vector<1x8x8xf32> -> vector<1x8x8xf32>
    %cst_73 = arith.constant -1.000000e+09 : f32
    "tpu.trace_stop"() : () -> ()
    %237 = vector.shape_cast %9 : vector<1x1x8xi1> to vector<1x1x8xi1>
    %238 = vector.broadcast %237 : vector<1x1x8xi1> to vector<1x8x8xi1>
    %239 = vector.broadcast %cst_73 : f32 to vector<1x8x8xf32>
    %240 = arith.select %238, %239, %236 : vector<1x8x8xi1>, vector<1x8x8xf32>
    %cst_74 = arith.constant dense<0xFF800000> : vector<1x8xf32>
    %241 = vector.multi_reduction <maximumf>, %240, %cst_74 [2] : vector<1x8x8xf32> to vector<1x8xf32>
    %242 = vector.shape_cast %241 : vector<1x8xf32> to vector<1x8x1xf32>
    %243 = vector.broadcast %242 : vector<1x8x1xf32> to vector<1x8x8xf32>
    %244 = arith.subf %240, %243 : vector<1x8x8xf32>
    %245 = math.exp %244 : vector<1x8x8xf32>
    %cst_75 = arith.constant dense<0.000000e+00> : vector<1x8xf32>
    %246 = vector.multi_reduction <add>, %245, %cst_75 [2] : vector<1x8x8xf32> to vector<1x8xf32>
    %247 = vector.shape_cast %246 : vector<1x8xf32> to vector<1x8x1xf32>
    %248 = vector.broadcast %247 : vector<1x8x1xf32> to vector<1x8x8xf32>
    %249 = arith.divf %245, %248 : vector<1x8x8xf32>
    %c0_76 = arith.constant 0 : index
    %c7 = arith.constant 7 : index
    %c0_77 = arith.constant 0 : index
    %c0_78 = arith.constant 0 : index
    %250 = vector.load %arg8[%c0_76, %c7, %c0_77, %c0_78] : memref<1x8x8x8xf32, #tpu.memory_space<vmem>>, vector<1x1x8x8xf32>
    %251 = vector.shape_cast %250 : vector<1x1x8x8xf32> to vector<1x8x8xf32>
    %252 = vector.shape_cast %249 : vector<1x8x8xf32> to vector<1x1x8x8xf32>
    tpu.vector_store %arg8[%c0_76, %c7, %c0_77, %c0_78], %252 {strides = array<i32>} : memref<1x8x8x8xf32, #tpu.memory_space<vmem>>, vector<1x1x8x8xf32>,
    %253 = arith.truncf %249 : vector<1x8x8xf32> to vector<1x8x8xbf16>
    "tpu.trace_start"() <{level = 10 : i32, message = "bqk,bkd->bqd"}> : () -> ()
    %cst_79 = arith.constant dense<0.000000e+00> : vector<1x8x64xf32>
    %254 = tpu.matmul %253, %235, %cst_79 {dimension_numbers = #tpu.dot_dimension_numbers<[2], [1], [1], [2], [0, 0, 0, 1, 1, 2], [0], [0]>} : vector<1x8x8xbf16>, vector<1x8x64xbf16>, vector<1x8x64xf32> -> vector<1x8x64xf32>
    "tpu.trace_stop"() : () -> ()
    %255 = vector.shape_cast %254 : vector<1x8x64xf32> to vector<8x64xf32>
    %256 = arith.truncf %255 : vector<8x64xf32> to vector<8x64xbf16>
    %c0_80 = arith.constant 0 : index
    %c448 = arith.constant 448 : index
    %257 = vector.load %arg9[%c0_80, %c448] : memref<8x512xbf16, #tpu.memory_space<vmem>>, vector<8x64xbf16>
    tpu.vector_store %arg9[%c0_80, %c448], %256 {strides = array<i32>} : memref<8x512xbf16, #tpu.memory_space<vmem>>, vector<8x64xbf16>,
    %c0_81 = arith.constant 0 : index
    %c0_82 = arith.constant 0 : index
    %258 = vector.load %arg9[%c0_81, %c0_82] : memref<8x512xbf16, #tpu.memory_space<vmem>>, vector<8x512xbf16>
    %c0_83 = arith.constant 0 : index
    %c0_84 = arith.constant 0 : index
    %259 = vector.load %arg4[%c0_83, %c0_84] : memref<512x64xbf16, #tpu.memory_space<vmem>>, vector<512x64xbf16>
    %cst_85 = arith.constant dense<0.000000e+00> : vector<8x64xf32>
    %260 = tpu.matmul %258, %259, %cst_85 {dimension_numbers = #tpu.dot_dimension_numbers<[1], [0], [0], [1], [0, 0, 1, 1], [], []>} : vector<8x512xbf16>, vector<512x64xbf16>, vector<8x64xf32> -> vector<8x64xf32>
    %261 = arith.addf %260, %0 : vector<8x64xf32>
    %cst_86 = arith.constant dense<0.000000e+00> : vector<8xf32>
    %262 = vector.multi_reduction <add>, %261, %cst_86 [1] : vector<8x64xf32> to vector<8xf32>
    %263 = vector.shape_cast %262 : vector<8xf32> to vector<8x1xf32>
    %cst_87 = arith.constant 6.400000e+01 : f32
    %264 = vector.broadcast %cst_87 : f32 to vector<8x1xf32>
    %265 = arith.divf %263, %264 : vector<8x1xf32>
    %266 = vector.broadcast %265 : vector<8x1xf32> to vector<8x64xf32>
    %267 = arith.subf %261, %266 : vector<8x64xf32>
    %268 = arith.mulf %267, %267 : vector<8x64xf32>
    %cst_88 = arith.constant dense<0.000000e+00> : vector<8xf32>
    %269 = vector.multi_reduction <add>, %268, %cst_88 [1] : vector<8x64xf32> to vector<8xf32>
    %270 = vector.shape_cast %269 : vector<8xf32> to vector<8x1xf32>
    %cst_89 = arith.constant 6.400000e+01 : f32
    %271 = vector.broadcast %cst_89 : f32 to vector<8x1xf32>
    %272 = arith.divf %270, %271 : vector<8x1xf32>
    %273 = vector.broadcast %265 : vector<8x1xf32> to vector<8x64xf32>
    %274 = arith.subf %261, %273 : vector<8x64xf32>
    %cst_90 = arith.constant 9.99999974E-6 : f32
    %275 = vector.broadcast %cst_90 : f32 to vector<8x1xf32>
    %276 = arith.addf %272, %275 : vector<8x1xf32>
    %277 = math.rsqrt %276 : vector<8x1xf32>
    %278 = vector.broadcast %277 : vector<8x1xf32> to vector<8x64xf32>
    %279 = arith.mulf %274, %278 : vector<8x64xf32>
    %280 = arith.truncf %279 : vector<8x64xf32> to vector<8x64xbf16>
    %c0_91 = arith.constant 0 : index
    %c0_92 = arith.constant 0 : index
    %281 = vector.load %arg5[%c0_91, %c0_92] : memref<64x512xbf16, #tpu.memory_space<vmem>>, vector<64x512xbf16>
    %cst_93 = arith.constant dense<0.000000e+00> : vector<8x512xf32>
    %282 = tpu.matmul %280, %281, %cst_93 {dimension_numbers = #tpu.dot_dimension_numbers<[1], [0], [0], [1], [0, 0, 1, 1], [], []>} : vector<8x64xbf16>, vector<64x512xbf16>, vector<8x512xf32> -> vector<8x512xf32>
    %cst_94 = arith.constant 0.000000e+00 : f32
    %283 = vector.broadcast %cst_94 : f32 to vector<8x512xf32>
    %284 = arith.maximumf %282, %283 : vector<8x512xf32>
    %285 = arith.truncf %284 : vector<8x512xf32> to vector<8x512xbf16>
    %c0_95 = arith.constant 0 : index
    %c0_96 = arith.constant 0 : index
    %286 = vector.load %arg6[%c0_95, %c0_96] : memref<512x64xbf16, #tpu.memory_space<vmem>>, vector<512x64xbf16>
    %cst_97 = arith.constant dense<0.000000e+00> : vector<8x64xf32>
    %287 = tpu.matmul %285, %286, %cst_97 {dimension_numbers = #tpu.dot_dimension_numbers<[1], [0], [0], [1], [0, 0, 1, 1], [], []>} : vector<8x512xbf16>, vector<512x64xbf16>, vector<8x64xf32> -> vector<8x64xf32>
    %288 = arith.addf %287, %279 : vector<8x64xf32>
    %cst_98 = arith.constant dense<0.000000e+00> : vector<8xf32>
    %289 = vector.multi_reduction <add>, %288, %cst_98 [1] : vector<8x64xf32> to vector<8xf32>
    %290 = vector.shape_cast %289 : vector<8xf32> to vector<8x1xf32>
    %cst_99 = arith.constant 6.400000e+01 : f32
    %291 = vector.broadcast %cst_99 : f32 to vector<8x1xf32>
    %292 = arith.divf %290, %291 : vector<8x1xf32>
    %293 = vector.broadcast %292 : vector<8x1xf32> to vector<8x64xf32>
    %294 = arith.subf %288, %293 : vector<8x64xf32>
    %295 = arith.mulf %294, %294 : vector<8x64xf32>
    %cst_100 = arith.constant dense<0.000000e+00> : vector<8xf32>
    %296 = vector.multi_reduction <add>, %295, %cst_100 [1] : vector<8x64xf32> to vector<8xf32>
    %297 = vector.shape_cast %296 : vector<8xf32> to vector<8x1xf32>
    %cst_101 = arith.constant 6.400000e+01 : f32
    %298 = vector.broadcast %cst_101 : f32 to vector<8x1xf32>
    %299 = arith.divf %297, %298 : vector<8x1xf32>
    %300 = vector.broadcast %292 : vector<8x1xf32> to vector<8x64xf32>
    %301 = arith.subf %288, %300 : vector<8x64xf32>
    %cst_102 = arith.constant 9.99999974E-6 : f32
    %302 = vector.broadcast %cst_102 : f32 to vector<8x1xf32>
    %303 = arith.addf %299, %302 : vector<8x1xf32>
    %304 = math.rsqrt %303 : vector<8x1xf32>
    %305 = vector.broadcast %304 : vector<8x1xf32> to vector<8x64xf32>
    %306 = arith.mulf %301, %305 : vector<8x64xf32>
    %c0_103 = arith.constant 0 : index
    %c0_104 = arith.constant 0 : index
    %307 = vector.load %arg7[%c0_103, %c0_104] : memref<8x64xf32, #tpu.memory_space<vmem>>, vector<8x64xf32>
    tpu.vector_store %arg7[%c0_103, %c0_104], %306 {strides = array<i32>} : memref<8x64xf32, #tpu.memory_space<vmem>>, vector<8x64xf32>,
    return
  }
  func.func @transform_0(%arg0: i32) -> (i32, i32) {
    %c0_i32 = arith.constant 0 : i32
    %c0_i32_0 = arith.constant 0 : i32
    return %arg0, %c0_i32 : i32, i32
  }
  func.func @transform_1(%arg0: i32) -> (i32, i32, i32) {
    %c0_i32 = arith.constant 0 : i32
    %c0_i32_0 = arith.constant 0 : i32
    %c0_i32_1 = arith.constant 0 : i32
    return %arg0, %c0_i32, %c0_i32_0 : i32, i32, i32
  }
  func.func @transform_2(%arg0: i32) -> (i32, i32) {
    %c0_i32 = arith.constant 0 : i32
    %c0_i32_0 = arith.constant 0 : i32
    %c0_i32_1 = arith.constant 0 : i32
    return %c0_i32, %c0_i32_0 : i32, i32
  }
  func.func @transform_3(%arg0: i32) -> (i32, i32) {
    %c0_i32 = arith.constant 0 : i32
    %c0_i32_0 = arith.constant 0 : i32
    %c0_i32_1 = arith.constant 0 : i32
    return %c0_i32, %c0_i32_0 : i32, i32
  }
  func.func @transform_4(%arg0: i32) -> (i32, i32) {
    %c0_i32 = arith.constant 0 : i32
    %c0_i32_0 = arith.constant 0 : i32
    %c0_i32_1 = arith.constant 0 : i32
    return %c0_i32, %c0_i32_0 : i32, i32
  }
  func.func @transform_5(%arg0: i32) -> (i32, i32) {
    %c0_i32 = arith.constant 0 : i32
    %c0_i32_0 = arith.constant 0 : i32
    %c0_i32_1 = arith.constant 0 : i32
    return %c0_i32, %c0_i32_0 : i32, i32
  }
  func.func @transform_6(%arg0: i32) -> (i32, i32) {
    %c0_i32 = arith.constant 0 : i32
    %c0_i32_0 = arith.constant 0 : i32
    return %arg0, %c0_i32 : i32, i32
  }
  func.func @transform_7(%arg0: i32) -> (i32, i32, i32, i32) {
    %c0_i32 = arith.constant 0 : i32
    %c0_i32_0 = arith.constant 0 : i32
    %c0_i32_1 = arith.constant 0 : i32
    %c0_i32_2 = arith.constant 0 : i32
    return %arg0, %c0_i32, %c0_i32_0, %c0_i32_1 : i32, i32, i32, i32
  }
}

</mosaic_0001>

<bundles_post_ra>
// kernel: tpu_custom_call.1
= control target key start
LH: loop header
LB: loop body
LE: loop exit
PB: predicated region body
PF: predicated region fallthrough
CT: control target
= control target key end

     0   :  { %s4211_s0 = inlined_call_operand.vmem [shape: f32[16,64], index: 0, kind: input, shape index: {}]   ;;  %s4212_s1 = inlined_call_operand.vmem [shape: f32[2,1,8], index: 1, kind: input, shape index: {}]   ;;  %s4213_s2 = inlined_call_operand.vmem [shape: bf16[64,1536], index: 2, kind: input, shape index: {}]   ;;  %s4214_s3 = inlined_call_operand.vmem [shape: bf16[512,64], index: 3, kind: input, shape index: {}]   ;;  %s4215_s4 = inlined_call_operand.vmem [shape: bf16[64,512], index: 4, kind: input, shape index: {}]   ;;  %s4216_s5 = inlined_call_operand.vmem [shape: bf16[512,64], index: 5, kind: input, shape index: {}]   ;;  %s4217_s6 = inlined_call_operand.hbm [shape: f32[16,64], index: 6, kind: output, shape index: {0}]   ;;  %s4218_s7 = inlined_call_operand.hbm [shape: f32[2,8,8,8], index: 7, kind: output, shape index: {1}]  }
   0x1   :  { %4219 = sst [smem:[#allocation9_spill]] %s4211_s0 }
   0x2   :  { %13 = vsyncpa [#allocation4], 0 }
   0x3   :  { %15 = vsyncpa [#allocation4 + $0x1], 0 }
   0x4   :  { %16 = vsyncpa [#allocation6], 0 }
   0x5   :  { %18 = vsyncpa [#allocation6 + $0x1], 0  ;;  %s3296_s24 = smov 0   ;;  %s3298_s25 = smov 0  }
   0x6   :  { %s3300_s26 = smov 0   ;;  %s3302_s27 = smov 0  }
   0x7 LB: > { %s3317_s28 = sadd.s32 4294967295, %s3249_s27   ;;  %s2373_s29 = sadd.s32 4294967294, %s3249_s27   ;;  %s3249_s27 = sphi %s3302_s27, %s4228_s27   ;;  %s3245_s26 = sphi %s3300_s26, %s4227_s26   ;;  %s3241_s25 = sphi %s3298_s25, %s4226_s25   ;;  %s3237_s24 = sphi %s3296_s24, %s4225_s24  }
   0x8   : > { %s3321_s30 = sadd.s32 1, %s3249_s27   ;;  %s167_s8 = sadd.s32 1, %s3245_s26 }
   0x9   : > { %s164_s9 = ssub.s32 %s3249_s27, %s3321_s30  ;;  %p177_p0 = scmp.ne.s32.totalorder %s3245_s26, %s3241_s25 }
   0xa   : > { %p165_p1 = scmp.eq.s32.totalorder %s164_s9, 0  ;;  %p178_p2 = scmp.eq.s32.totalorder %s3317_s28, 1 }
   0xb   : > { %p183_p3 = scmp.ne.s32.totalorder %s3241_s25, %s3237_s24  ;;  %p184_p4 = scmp.eq.s32.totalorder %s2373_s29, 1 }
   0xc   : > { %s3332_s10 = scalar_select %p165_p1, %s3245_s26, %s167_s8  }
   0xd   : > { %p3334_p5 = por %p178_p2, %p177_p0  ;;  %p3338_p6 = por %p184_p4, %p183_p3 }
   0xe   : > { %p2376_p7 = scmp.ge.s32.totalorder %s3249_s27, 1  ;;  %p253_p8 = scmp.lt.s32.totalorder %s3249_s27, 3 }
  0x10   : > { %p254_p9 = pnand %p2376_p7, %p253_p8 }
  0x11   : > { %p292_p10 = scmp.lt.s32.totalorder (!%p254_p9), %s3317_s28, 1  ;;  %s4222_s0 = sld [smem:[#allocation9_spill]] (!%p254_p9) }
  0x12   : > { %257 = sbr.rel (%p254_p9) target bundleno = 1965 (0x7ad), region = 44  ;;  %s3251_s8 = smov (!%p254_p9), 64  }
  0x13   : > { %s3800_s19 = sand.u32 (!%p254_p9), 1, %s3241_s25  }
  0x14   : > { %s2378_s21 = sshll.u32 (!%p254_p9), %s3800_s19, 6 }
  0x17   : > { %v2526_v0 = vld [vmem:[%s4213_s2 + $0x120] sm:$0xf]  ;;  %v2980_v1 = vld [vmem:[%s4213_s2 + $0x14c] sm:$0xf0]  ;;  %v2974_v2 = vld [vmem:[%s4213_s2 + $0x124] sm:$0xf] }
  0x18   : > { %v2527_v3 = vor.u32 %v2980_v1, %v2526_v0  ;;  %v2528_v4 = vld [vmem:[%s4213_s2 + $0x150] sm:$0xf0]  ;;  %v2478_v5 = vld [vmem:[%s4213_s2 + $0xc0] sm:$0xf]  ;;  %v2968_v6 = vld [vmem:[%s4213_s2 + $0xec] sm:$0xf0] }
  0x19   : > { %v2531_v7 = vor.u32 %v2974_v2, %v2528_v4  ;;  %v2962_v8 = vld [vmem:[%s4213_s2 + $0xc4] sm:$0xf]  ;;  %v2480_v9 = vld [vmem:[%s4213_s2 + $0xf0] sm:$0xf0]  ;;  %v2479_v10 = vor.u32 %v2968_v6, %v2478_v5  ;;  %v2430_v12 = vld [vmem:[%s4213_s2 + $0x60] sm:$0xf] }
  0x1a   : > { %598 = vmatpush.bf16.msra.mxu0 %v2527_v3  ;;  %v2483_v11 = vor.u32 %v2962_v8, %v2480_v9  ;;  %v2956_v13 = vld [vmem:[%s4213_s2 + $0x8c] sm:$0xf0]  ;;  %v2950_v14 = vld [vmem:[%s4213_s2 + $0x64] sm:$0xf]  ;;  %v2432_v15 = vld [vmem:[%s4213_s2 + $0x90] sm:$0xf0] }
  0x1b   : > { %611 = vmatpush.bf16.msra.mxu1 %v2531_v7  ;;  %v2431_v16 = vor.u32 %v2956_v13, %v2430_v12  ;;  %v2382_v17 = vld [vmem:[%s4213_s2] sm:$0xf]  ;;  %v2944_v18 = vld [vmem:[%s4213_s2 + $0x2c] sm:$0xf0]  ;;  %s3388_s13 = scalar_select %p292_p10, %s3317_s28, 1  ;;  %v2435_v19 = vor.u32 %v2950_v14, %v2432_v15  ;;  %vm590_vm0 = vcmask 523264  }
  0x1c   : > { %v2938_v20 = vld [vmem:[%s4213_s2 + $0x4] sm:$0xf]  ;;  %v2384_v21 = vld [vmem:[%s4213_s2 + $0x30] sm:$0xf0]  ;;  %v2542_v22 = vld [vmem:[%s4213_s2 + $0x130] sm:$0xf]  ;;  %v2383_v28 = vor.u32 %v2944_v18, %v2382_v17 }
  0x1d   : > { %s2379_s20 = sshll.u32 %s3388_s13, 3  ;;  %v2982_v23 = vld [vmem:[%s4213_s2 + $0x15c] sm:$0xf0]  ;;  %v2976_v24 = vld [vmem:[%s4213_s2 + $0x134] sm:$0xf]  ;;  %v2387_v31 = vor.u32 %v2938_v20, %v2384_v21  ;;  %vm808_vm1 = vcmask 1043456   ;;  %s298_s15 = scalar_lea.vmem %s4212_s1, %s3388_s13 }
  0x1e   : > { %599 = vmatpush.bf16.msra.mxu0 %v2479_v10  ;;  %s3409_s14 = scalar_lea.vmem %s4222_s0, %s2379_s20  ;;  %v2544_v25 = vld [vmem:[%s4213_s2 + $0x160] sm:$0xf0]  ;;  %v2534_v26 = vld [vmem:[%s4213_s2 + $0x128] sm:$0xf]  ;;  %v2981_v27 = vld [vmem:[%s4213_s2 + $0x154] sm:$0xf0]  ;;  %v2543_v32 = vor.u32 %v2982_v23, %v2542_v22 }
  0x1f   : > { %612 = vmatpush.bf16.msra.mxu1 %v2483_v11  ;;  %v300_v29 = vld [vmem:[%s3409_s14] sm:$0xff]  ;;  %v2535_v30 = vor.u32 %v2981_v27, %v2534_v26  ;;  %v2494_v33 = vld [vmem:[%s4213_s2 + $0xd0] sm:$0xf]  ;;  %v2486_v35 = vld [vmem:[%s4213_s2 + $0xc8] sm:$0xf]  ;;  %v2547_v36 = vor.u32 %v2976_v24, %v2544_v25  ;;  %vm778_vm4 = vcmask 64512  }
  0x20   : > { %v2970_v34 = vld [vmem:[%s4213_s2 + $0xfc] sm:$0xf0]  ;;  %v2964_v37 = vld [vmem:[%s4213_s2 + $0xd4] sm:$0xf]  ;;  %v2496_v38 = vld [vmem:[%s4213_s2 + $0x100] sm:$0xf0]  ;;  %v3439_v40 = vpack.c.bf16 %v300_v29, %v300_v29 }
  0x21   : > { %624 = vmatpush.bf16.msra.mxu2 %v2535_v30  ;;  %v2969_v39 = vld [vmem:[%s4213_s2 + $0xf4] sm:$0xf0]  ;;  %v2438_v42 = vld [vmem:[%s4213_s2 + $0x68] sm:$0xf]  ;;  %v2975_v44 = vld [vmem:[%s4213_s2 + $0x12c] sm:$0xf]  ;;  %v2495_v46 = vor.u32 %v2970_v34, %v2494_v33  ;;  %v2499_v51 = vor.u32 %v2964_v37, %v2496_v38 }
  0x22   : > { %600 = vmatpush.bf16.msra.mxu0 %v2431_v16  ;;  %v2487_v41 = vor.u32 %v2969_v39, %v2486_v35  ;;  %v2957_v43 = vld [vmem:[%s4213_s2 + $0x94] sm:$0xf0]  ;;  %v2536_v45 = vld [vmem:[%s4213_s2 + $0x158] sm:$0xf0]  ;;  %v2446_v47 = vld [vmem:[%s4213_s2 + $0x70] sm:$0xf] }
  0x23   : > { %613 = vmatpush.bf16.msra.mxu1 %v2435_v19  ;;  %v2539_v48 = vor.u32 %v2975_v44, %v2536_v45  ;;  %v2963_v49 = vld [vmem:[%s4213_s2 + $0xcc] sm:$0xf]  ;;  %v2488_v50 = vld [vmem:[%s4213_s2 + $0xf8] sm:$0xf0]  ;;  %v2958_v52 = vld [vmem:[%s4213_s2 + $0x9c] sm:$0xf0]  ;;  %v2439_v55 = vor.u32 %v2957_v43, %v2438_v42 }
  0x24   : > { %v2952_v53 = vld [vmem:[%s4213_s2 + $0x74] sm:$0xf]  ;;  %v2448_v54 = vld [vmem:[%s4213_s2 + $0xa0] sm:$0xf0]  ;;  %v2390_v56 = vld [vmem:[%s4213_s2 + $0x8] sm:$0xf]  ;;  %v2491_v59 = vor.u32 %v2963_v49, %v2488_v50  ;;  %v2447_v63 = vor.u32 %v2958_v52, %v2446_v47 }
  0x25   : > { %625 = vmatpush.bf16.msra.mxu2 %v2487_v41  ;;  %v2945_v57 = vld [vmem:[%s4213_s2 + $0x34] sm:$0xf0]  ;;  %637 = vmatpush.bf16.msra.mxu3 %v2539_v48  ;;  %v2983_v60 = vld [vmem:[%s4213_s2 + $0x164] sm:$0xf0]  ;;  %v2951_v61 = vld [vmem:[%s4213_s2 + $0x6c] sm:$0xf]  ;;  %v2451_v1 = vor.u32 %v2952_v53, %v2448_v54 }
  0x26   : > { %601 = vmatpush.bf16.msra.mxu0 %v2383_v28  ;;  %v2550_v58 = vld [vmem:[%s4213_s2 + $0x138] sm:$0xf]  ;;  %v2440_v62 = vld [vmem:[%s4213_s2 + $0x98] sm:$0xf0]  ;;  %v2398_v0 = vld [vmem:[%s4213_s2 + $0x10] sm:$0xf]  ;;  %v2391_v5 = vor.u32 %v2945_v57, %v2390_v56 }
  0x27   : > { %614 = vmatpush.bf16.msra.mxu1 %v2387_v31  ;;  %v2946_v2 = vld [vmem:[%s4213_s2 + $0x3c] sm:$0xf0]  ;;  %v2940_v3 = vld [vmem:[%s4213_s2 + $0x14] sm:$0xf]  ;;  %v2400_v4 = vld [vmem:[%s4213_s2 + $0x40] sm:$0xf0]  ;;  %v2551_v6 = vor.u32 %v2983_v60, %v2550_v58  ;;  %v2443_v9 = vor.u32 %v2951_v61, %v2440_v62 }
  0x28   : > { %v2502_v7 = vld [vmem:[%s4213_s2 + $0xd8] sm:$0xf]  ;;  %v2971_v8 = vld [vmem:[%s4213_s2 + $0x104] sm:$0xf0]  ;;  %v2558_v10 = vld [vmem:[%s4213_s2 + $0x140] sm:$0xf]  ;;  %v2399_v14 = vor.u32 %v2946_v2, %v2398_v0  ;;  %v2403_v17 = vor.u32 %v2940_v3, %v2400_v4 }
  0x29   : > { %2572 = vmatmul.msk.bf16.vlgmr.msra.gmra.mxu0 %vm590_vm0, %v3439_v40  ;;  %626 = vmatpush.bf16.msra.mxu2 %v2439_v55  ;;  %v2939_v11 = vld [vmem:[%s4213_s2 + $0xc] sm:$0xf]  ;;  %v2392_v12 = vld [vmem:[%s4213_s2 + $0x38] sm:$0xf0]  ;;  %v2984_v13 = vld [vmem:[%s4213_s2 + $0x16c] sm:$0xf0]  ;;  %v2503_v19 = vor.u32 %v2971_v8, %v2502_v7 }
  0x2a   : > { %650 = vmatpush.bf16.msrb.mxu0 %v2543_v32  ;;  %2573 = vmatmul.msk.bf16.vlgmr.msra.gmra.mxu1 %vm590_vm0, %v3439_v40  ;;  %v2977_v15 = vld [vmem:[%s4213_s2 + $0x13c] sm:$0xf]  ;;  %v2552_v16 = vld [vmem:[%s4213_s2 + $0x168] sm:$0xf0]  ;;  %v2559_v18 = vor.u32 %v2984_v13, %v2558_v10  ;;  %v2395_v20 = vor.u32 %v2939_v11, %v2392_v12  ;;  %v2454_v21 = vld [vmem:[%s4213_s2 + $0x78] sm:$0xf] }
  0x2b   : > { %663 = vmatpush.bf16.msrb.mxu1 %v2547_v36  ;;  %638 = vmatpush.bf16.msra.mxu3 %v2491_v59  ;;  %v2959_v22 = vld [vmem:[%s4213_s2 + $0xa4] sm:$0xf0]  ;;  %v2555_v23 = vor.u32 %v2977_v15, %v2552_v16  ;;  %v2965_v24 = vld [vmem:[%s4213_s2 + $0xdc] sm:$0xf]  ;;  %v2504_v25 = vld [vmem:[%s4213_s2 + $0x108] sm:$0xf0] }
  0x2c   : > { %v2455_v26 = vor.u32 %v2959_v22, %v2454_v21  ;;  %v2406_v27 = vld [vmem:[%s4213_s2 + $0x18] sm:$0xf]  ;;  %v2947_v28 = vld [vmem:[%s4213_s2 + $0x44] sm:$0xf0]  ;;  %v2507_v29 = vor.u32 %v2965_v24, %v2504_v25  ;;  %v2953_v30 = vld [vmem:[%s4213_s2 + $0x7c] sm:$0xf] }
  0x2d   : > { %627 = vmatpush.bf16.msra.mxu2 %v2391_v5  ;;  %v2456_v31 = vld [vmem:[%s4213_s2 + $0xa8] sm:$0xf0]  ;;  %v2407_v32 = vor.u32 %v2947_v28, %v2406_v27  ;;  %v2941_v34 = vld [vmem:[%s4213_s2 + $0x1c] sm:$0xf]  ;;  %v2510_v37 = vld [vmem:[%s4213_s2 + $0xe0] sm:$0xf] }
  0x2e   : > { %651 = vmatpush.bf16.msrb.mxu0 %v2495_v46  ;;  %v2459_v33 = vor.u32 %v2953_v30, %v2456_v31  ;;  %v2408_v35 = vld [vmem:[%s4213_s2 + $0x48] sm:$0xf0]  ;;  %v2972_v38 = vld [vmem:[%s4213_s2 + $0x10c] sm:$0xf0]  ;;  %v2462_v41 = vld [vmem:[%s4213_s2 + $0x80] sm:$0xf] }
  0x2f   : > { %664 = vmatpush.bf16.msrb.mxu1 %v2499_v51  ;;  %639 = vmatpush.bf16.msra.mxu3 %v2443_v9  ;;  %v2411_v36 = vor.u32 %v2941_v34, %v2408_v35  ;;  %v2511_v39 = vor.u32 %v2972_v38, %v2510_v37  ;;  %v2960_v42 = vld [vmem:[%s4213_s2 + $0xac] sm:$0xf0]  ;;  %v2414_v44 = vld [vmem:[%s4213_s2 + $0x20] sm:$0xf]  ;;  %v2985_v27 = vld [vmem:[%s4213_s2 + $0x174] sm:$0xf0] }
  0x30   : > { %2574 = vmatmul.msk.bf16.vlgmr.msra.gmra.mxu2 %vm590_vm0, %v3439_v40  ;;  %v2463_v43 = vor.u32 %v2960_v42, %v2462_v41  ;;  %v2948_v45 = vld [vmem:[%s4213_s2 + $0x4c] sm:$0xf0]  ;;  %v2518_v28 = vld [vmem:[%s4213_s2 + $0xe8] sm:$0xf]  ;;  %v2973_v30 = vld [vmem:[%s4213_s2 + $0x114] sm:$0xf0] }
  0x31   : > { %676 = vmatpush.bf16.msrb.mxu2 %v2551_v6  ;;  %v2415_v46 = vor.u32 %v2948_v45, %v2414_v44  ;;  %v2961_v34 = vld [vmem:[%s4213_s2 + $0xb4] sm:$0xf0]  ;;  %s3806_s20 = scalar_lea.vmem [#allocation5], %s2378_s21  ;;  %s3066_s13 = sshll.u32 %s3317_s28, 6 }
  0x32   : > { %652 = vmatpush.bf16.msrb.mxu0 %v2447_v63  ;;  %v2949_v37 = vld [vmem:[%s4213_s2 + $0x54] sm:$0xf0]  ;;  %s2240_s21 = scalar_lea.sflag [#allocation6], %s3800_s19 }
  0x33   : > { %665 = vmatpush.bf16.msrb.mxu1 %v2451_v1  ;;  %640 = vmatpush.bf16.msra.mxu3 %v2395_v20 }
  0x35   : > { %677 = vmatpush.bf16.msrb.mxu2 %v2503_v19 }
  0x36   : > { %653 = vmatpush.bf16.msrb.mxu0 %v2399_v14  ;;  %2575 = vmatmul.msk.bf16.vlgmr.msra.gmra.mxu3 %vm590_vm0, %v3439_v40 }
  0x37   : > { %666 = vmatpush.bf16.msrb.mxu1 %v2403_v17  ;;  %689 = vmatpush.bf16.msrb.mxu3 %v2555_v23 }
  0x39   : > { %2576 = vmatmul.msk.bf16.vlgmr.msrb.gmra.mxu0 %vm590_vm0, %v3439_v40  ;;  %678 = vmatpush.bf16.msrb.mxu2 %v2455_v26  ;;  %v2566_v26 = vld [vmem:[%s4213_s2 + $0x148] sm:$0xf] }
  0x3a   : > { %702 = vmatpush.bf16.msra.mxu0 %v2559_v18  ;;  %2577 = vmatmul.msk.bf16.vlgmr.msrb.gmra.mxu1 %vm590_vm0, %v3439_v40 }
  0x3b   : > { %690 = vmatpush.bf16.msrb.mxu3 %v2507_v29  ;;  %v2567_v29 = vor.u32 %v2985_v27, %v2566_v26  ;;  %v2979_v26 = vld [vmem:[%s4213_s2 + $0x14c] sm:$0xf]  ;;  %v2568_v27 = vld [vmem:[%s4213_s2 + $0x178] sm:$0xf0] }
  0x3d   : > { %679 = vmatpush.bf16.msrb.mxu2 %v2407_v32  ;;  %v2519_v32 = vor.u32 %v2973_v30, %v2518_v28 }
  0x3e   : > { %703 = vmatpush.bf16.msra.mxu0 %v2511_v39 }
  0x3f   : > { %691 = vmatpush.bf16.msrb.mxu3 %v2459_v33  ;;  %v2470_v33 = vld [vmem:[%s4213_s2 + $0x88] sm:$0xf] }
  0x40   : > { %2578 = vmatmul.msk.bf16.vlgmr.msrb.gmra.mxu2 %vm590_vm0, %v3439_v40  ;;  %v2471_v35 = vor.u32 %v2961_v34, %v2470_v33 }
  0x41   : > { %728 = vmatpush.bf16.msra.mxu2 %v2567_v29  ;;  %v2571_v29 = vor.u32 %v2979_v26, %v2568_v27 }
  0x42   : > { %704 = vmatpush.bf16.msra.mxu0 %v2463_v43 }
  0x43   : > { %692 = vmatpush.bf16.msrb.mxu3 %v2411_v36  ;;  %v2422_v36 = vld [vmem:[%s4213_s2 + $0x28] sm:$0xf] }
  0x44   : > { %v2423_v38 = vor.u32 %v2949_v37, %v2422_v36  ;;  %v2472_v36 = vld [vmem:[%s4213_s2 + $0xb8] sm:$0xf0] }
  0x45   : > { %729 = vmatpush.bf16.msra.mxu2 %v2519_v32  ;;  %v2520_v32 = vld [vmem:[%s4213_s2 + $0x118] sm:$0xf0] }
  0x46   : > { %2579 = vmatmul.msk.bf16.vlgmr.msrb.gmra.mxu3 %vm590_vm0, %v3439_v40  ;;  %705 = vmatpush.bf16.msra.mxu0 %v2415_v46 }
  0x47   : > { %741 = vmatpush.bf16.msra.mxu3 %v2571_v29 }
  0x49   : > { %2580 = vmatmul.msk.bf16.vlgmr.msra.gmra.mxu0 %vm590_vm0, %v3439_v40  ;;  %730 = vmatpush.bf16.msra.mxu2 %v2471_v35  ;;  %v2955_v35 = vld [vmem:[%s4213_s2 + $0x8c] sm:$0xf] }
  0x4a   : > { %v2475_v37 = vor.u32 %v2955_v35, %v2472_v36 }
  0x4d   : > { %731 = vmatpush.bf16.msra.mxu2 %v2423_v38  ;;  %v2943_v38 = vld [vmem:[%s4213_s2 + $0x2c] sm:$0xf] }
  0x50   : > { %2582 = vmatmul.msk.bf16.vlgmr.msra.gmra.mxu2 %vm590_vm0, %v3439_v40 }
  0xa6   : > { %v603_v47 = vpop.f32.mrf.mxu0 }
  0xa7   : > { %v616_v48 = vpop.f32.mrf.mxu1  ;;  %v752_v60 = vpack.c.bf16 %v603_v47, %v603_v47 }
  0xa8   : > { %v916_v63 = vpack.c.bf16 %v616_v48, %v616_v48 }
  0xa9   : > { %v829_v3 = vunpack.c.l.b16 %v752_v60 }
  0xaa   : > { %v988_v5 = vunpack.c.l.b16 %v916_v63 }
  0xab   : > { %v830_v7 = vpack.c.b16 %v829_v3, %v829_v3  ;;  %v2942_v3 = vld [vmem:[%s4213_s2 + $0x24] sm:$0xf] }
  0xac   : > { %v989_v9 = vpack.c.b16 %v988_v5, %v988_v5 }
  0xae   : > { %v605_v49 = vpop.f32.mrf.mxu0 }
  0xaf   : > { %v618_v50 = vpop.f32.mrf.mxu1 }
  0xb3   : > { %v629_v52 = vpop.f32.mrf.mxu2 }
  0xb4   : > { %v1074_v16 = vpack.c.bf16 %v629_v52, %v629_v52 }
  0xb6   : > { %v655_v51 = vpop.f32.mrf.mxu0  ;;  %v1146_v20 = vunpack.c.l.b16 %v1074_v16 }
  0xb7   : > { %v753_v53 = vpack.c.bf16 %v655_v51, %v655_v51  ;;  %v668_v54 = vpop.f32.mrf.mxu1 }
  0xb8   : > { %v917_v55 = vpack.c.bf16 %v668_v54, %v668_v54  ;;  %v1147_v25 = vpack.c.b16 %v1146_v20, %v1146_v20 }
  0xb9   : > { %v759_v56 = vsel %vm590_vm0, %v753_v53, 0  ;;  %v834_v57 = vunpack.c.l.b16 %v753_v53  ;;  %v642_v62 = vpop.f32.mrf.mxu3 }
  0xba   : > { %v923_v58 = vsel %vm590_vm0, %v917_v55, 0  ;;  %768 = vmatpush.bf16.xpose.msrb.mxu0 %v759_v56  ;;  %v993_v59 = vunpack.c.l.b16 %v917_v55  ;;  %v1232_v6 = vpack.c.bf16 %v642_v62, %v642_v62  ;;  %v2978_v56 = vld [vmem:[%s4213_s2 + $0x144] sm:$0xf] }
  0xbb   : > { %v835_v61 = vpack.c.b16 %v834_v57, %v834_v57  ;;  %v631_v2 = vpop.f32.mrf.mxu2  ;;  %v2560_v57 = vld [vmem:[%s4213_s2 + $0x170] sm:$0xf0] }
  0xbc   : > { %v994_v0 = vpack.c.b16 %v993_v59, %v993_v59  ;;  %v1304_v10 = vunpack.c.l.b16 %v1232_v6 }
  0xbd   : > { %836 = vrot.lane.b32.xlu0 %v835_v61, %s3251_s8  ;;  %v2512_v61 = vld [vmem:[%s4213_s2 + $0x110] sm:$0xf0] }
  0xbe   : > { %995 = vrot.lane.b32.xlu1 %v994_v0, %s3251_s8  ;;  %v657_v1 = vpop.f32.mrf.mxu0  ;;  %v1305_v15 = vpack.c.b16 %v1304_v10, %v1304_v10  ;;  %v2464_v0 = vld [vmem:[%s4213_s2 + $0xb0] sm:$0xf0] }
  0xbf   : > { %v670_v4 = vpop.f32.mrf.mxu1 }
  0xc0   : > { %v2416_v4 = vld [vmem:[%s4213_s2 + $0x50] sm:$0xf0] }
  0xc1   : > { %2584 = vmatmul.msk.bf16.vlgmr.msrb.gmra.mxu0 %vm590_vm0, %v752_v60  ;;  %v644_v8 = vpop.f32.mrf.mxu3  ;;  %v2563_v60 = vor.u32 %v2978_v56, %v2560_v57 }
  0xc2   : > { %932 = vmatpush.bf16.xpose.msra.mxu0 %v923_v58  ;;  %v2966_v58 = vld [vmem:[%s4213_s2 + $0xe4] sm:$0xf] }
  0xc3   : > { %v681_v11 = vpop.f32.mrf.mxu2  ;;  %715 = vmatpush.bf16.msra.mxu1 %v2563_v60  ;;  %v2515_v62 = vor.u32 %v2966_v58, %v2512_v61 }
  0xc4   : > { %v1075_v12 = vpack.c.bf16 %v681_v11, %v681_v11 }
  0xc5   : > { %831 = vrot.lane.b32.xlu0 %v830_v7, %s3251_s8 }
  0xc6   : > { %990 = vrot.lane.b32.xlu1 %v989_v9, %s3251_s8  ;;  %v1081_v13 = vsel %vm590_vm0, %v1075_v12, 0  ;;  %v1151_v14 = vunpack.c.l.b16 %v1075_v12  ;;  %v707_v39 = vpop.f32.mrf.mxu0 }
  0xc7   : > { %716 = vmatpush.bf16.msra.mxu1 %v2515_v62  ;;  %v3668_v5 = vpack.c.bf16 %v707_v39, %v707_v39  ;;  %v2424_v39 = vld [vmem:[%s4213_s2 + $0x58] sm:$0xf0] }
  0xc8   : > { %v1152_v17 = vpack.c.b16 %v1151_v14, %v1151_v14  ;;  %v750_v14 = vld [vmem:[%s298_s15] sm:$0x1]  ;;  %s2266_s15 = sshll.u32 %s3806_s20, 4  ;;  %s2267_s15 = int_to_ptr.vmem [resolvable:$true] %s2266_s15 }
  0xc9   : > { %v694_v18 = vpop.f32.mrf.mxu3  ;;  %v810_v7 = vsel %vm808_vm1, %v3668_v5, 0  ;;  %vm751_vm2 = vcmp.ne.f32.partialorder %v750_v14, 0.0 }
  0xca   : > { %1090 = vmatpush.bf16.xpose.msrb.mxu0 %v1081_v13  ;;  %v1233_v19 = vpack.c.bf16 %v694_v18, %v694_v18  ;;  %1153 = vrot.lane.b32.xlu2 %v1152_v17, %s3251_s8 }
  0xcb   : > { %v683_v22 = vpop.f32.mrf.mxu2 }
  0xcc   : > { %v1309_v21 = vunpack.c.l.b16 %v1233_v19  ;;  %v1239_v23 = vsel %vm590_vm0, %v1233_v19, 0 }
  0xce   : > { %1306 = vrot.lane.b32.xlu1 %v1305_v15, %s3251_s8  ;;  %v1310_v24 = vpack.c.b16 %v1309_v21, %v1309_v21  ;;  %v709_v41 = vpop.f32.mrf.mxu0  ;;  %v3252_v15 = vmov 0  }
  0xcf   : > { %v2427_v41 = vor.u32 %v2943_v38, %v2424_v39 }
  0xd0   : > { %1311 = vrot.lane.b32.xlu0 %v1310_v24, %s3251_s8 }
  0xd1   : > { %2589 = vmatmul.msk.bf16.vlgmr.msra.gmra.mxu0 %vm590_vm0, %v916_v63  ;;  %v696_v31 = vpop.f32.mrf.mxu3  ;;  %v2954_v63 = vld [vmem:[%s4213_s2 + $0x84] sm:$0xf] }
  0xd2   : > { %1248 = vmatpush.bf16.xpose.msra.mxu0 %v1239_v23  ;;  %1148 = vrot.lane.b32.xlu2 %v1147_v25, %s3251_s8  ;;  %v2467_v1 = vor.u32 %v2954_v63, %v2464_v0  ;;  %v2967_v31 = vld [vmem:[%s4213_s2 + $0xec] sm:$0xf] }
  0xd3   : > { %v3672_v9 = vpop.f32.mrf.mxu2  ;;  %v2523_v33 = vor.u32 %v2967_v31, %v2520_v32 }
  0xd4   : > { %717 = vmatpush.bf16.msra.mxu1 %v2467_v1 }
  0xd5   : > { %742 = vmatpush.bf16.msra.mxu3 %v2523_v33 }
  0xd9   : > { %743 = vmatpush.bf16.msra.mxu3 %v2475_v37 }
  0xdb   : > { %v735_v12 = vpop.f32.mrf.mxu2 }
  0xdd   : > { %744 = vmatpush.bf16.msra.mxu3 %v2427_v41 }
  0xe0   : > { %2583 = vmatmul.msk.bf16.vlgmr.msra.gmra.mxu3 %vm590_vm0, %v3439_v40 }
  0xe1   : > { %2595 = vmatmul.msk.bf16.vlgmr.msrb.gmra.mxu0 %vm590_vm0, %v1074_v16  ;;  %v774_v16 = vsel %vm751_vm2, 1, %v3252_v15 }
  0xe2   : > { %v775_v17 = vperm.slane %v774_v16, 0 }
  0xe4   : > { %vm3681_vm3 = vcmp.eq.s32.totalorder %v775_v17, 1 }
  0xf1   : > { %2601 = vmatmul.msk.bf16.vlgmr.msra.gmra.mxu0 %vm590_vm0, %v1232_v6  ;;  %v2419_v6 = vor.u32 %v2942_v3, %v2416_v4 }
  0xf3   : > { %718 = vmatpush.bf16.msra.mxu1 %v2419_v6 }
  0xf6   : > { %2581 = vmatmul.msk.bf16.vlgmr.msra.gmra.mxu1 %vm590_vm0, %v3439_v40 }
  0xf7   : > { %819 = vmatpush.bf16.msrb.mxu1 %v810_v7 }
 0x124   : > { %v1154_v46 = vpop.permute.xlu2 %1153 }
 0x125   : > { %v1159_v47 = vsel %vm590_vm0, %v1154_v46, 0 }
 0x12c   : > { %v1149_v59 = vpop.permute.xlu2 %1148 }
 0x12f   : > { %v837_v42 = vpop.permute.xlu0 %836 }
 0x130   : > { %v996_v43 = vpop.permute.xlu1 %995  ;;  %v842_v44 = vsel %vm590_vm0, %v837_v42, 0 }
 0x131   : > { %v1001_v45 = vsel %vm590_vm0, %v996_v43, 0  ;;  %851 = vmatpush.bf16.xpose.msrb.mxu2 %v842_v44 }
 0x137   : > { %v832_v48 = vpop.permute.xlu0 %831 }
 0x138   : > { %2586 = vmatmul.msk.bf16.vlgmr.msrb.gmra.mxu2 %vm590_vm0, %v832_v48  ;;  %v991_v53 = vpop.permute.xlu1 %990 }
 0x139   : > { %1010 = vmatpush.bf16.xpose.msra.mxu2 %v1001_v45 }
 0x13e   : > { %v770_v49 = vpop.f32.mrf.mxu0 }
 0x13f   : > { %v3693_v22 = vsel %vm3681_vm3, -1e+09, %v770_v49 }
 0x140   : > { %v1307_v10 = vpop.permute.xlu1 %1306  ;;  %v779_v24 = vsel %vm778_vm4, %v3693_v22, -inf }
 0x141   : > { %1168 = vmatpush.bf16.xpose.msrb.mxu2 %v1159_v47 }
 0x142   : > { %v1312_v50 = vpop.permute.xlu0 %1311 }
 0x143   : > { %v1317_v52 = vsel %vm590_vm0, %v1312_v50, 0 }
 0x146   : > { %v772_v51 = vpop.f32.mrf.mxu0 }
 0x148   : > { %2592 = vmatmul.msk.bf16.vlgmr.msra.gmra.mxu2 %vm590_vm0, %v991_v53 }
 0x149   : > { %1326 = vmatpush.bf16.xpose.msra.mxu2 %v1317_v52 }
 0x14e   : > { %v3639_v54 = vpop.f32.mrf.mxu0 }
 0x14f   : > { %v938_v45 = vsel %vm3681_vm3, -1e+09, %v3639_v54 }
 0x150   : > { %v939_v47 = vsel %vm778_vm4, %v938_v45, -inf }
 0x156   : > { %v936_v55 = vpop.f32.mrf.mxu0 }
 0x157   : > { %v3751_v55 = vpack.c.bf16 %v3672_v9, %v3672_v9 }
 0x158   : > { %2598 = vmatmul.msk.bf16.vlgmr.msrb.gmra.mxu2 %vm590_vm0, %v1149_v59 }
 0x159   : > { %v1203_v56 = vunpack.c.l.b16 %v3751_v55 }
 0x15b   : > { %v1204_v57 = vpack.c.b16 %v1203_v56, %v1203_v56 }
 0x15e   : > { %v3660_v2 = vpop.f32.mrf.mxu0 }
 0x15f   : > { %v3736_v48 = vsel %vm3681_vm3, -1e+09, %v3660_v2 }
 0x160   : > { %v1097_v51 = vsel %vm778_vm4, %v3736_v48, -inf }
 0x166   : > { %v1094_v8 = vpop.f32.mrf.mxu0 }
 0x168   : > { %2604 = vmatmul.msk.bf16.vlgmr.msra.gmra.mxu2 %vm590_vm0, %v1307_v10  ;;  %v886_v10 = vunpack.c.l.b16 %v3668_v5 }
 0x16a   : > { %v887_v12 = vpack.c.b16 %v886_v10, %v886_v10 }
 0x16e   : > { %v1250_v11 = vpop.f32.mrf.mxu0 }
 0x16f   : > { %v3745_v52 = vsel %vm3681_vm3, -1e+09, %v1250_v11 }
 0x170   : > { %v1255_v54 = vsel %vm778_vm4, %v3745_v52, -inf }
 0x173   : > { %v720_v58 = vpop.f32.mrf.mxu1 }
 0x174   : > { %v918_v59 = vpack.c.bf16 %v720_v58, %v720_v58 }
 0x176   : > { %v1252_v13 = vpop.f32.mrf.mxu0  ;;  %v970_v60 = vsel %vm808_vm1, %v918_v59, 0  ;;  %v1045_v61 = vunpack.c.l.b16 %v918_v59 }
 0x177   : > { %979 = vmatpush.bf16.msra.mxu1 %v970_v60 }
 0x178   : > { %v1046_v62 = vpack.c.b16 %v1045_v61, %v1045_v61 }
 0x17b   : > { %v722_v63 = vpop.f32.mrf.mxu1 }
 0x1bb   : > { %v853_v19 = vpop.f32.mrf.mxu2 }
 0x1bc   : > { %v3687_v20 = vsel %vm3681_vm3, -1e+09, %v853_v19 }
 0x1bd   : > { %v858_v21 = vsel %vm778_vm4, %v3687_v20, -inf }
 0x1be   : > { %859 = vmax.xlane.f32.xlu2 %v858_v21  ;;  %v746_v21 = vpop.f32.mrf.mxu3 }
 0x1bf   : > { %v3784_v37 = vpack.c.bf16 %v746_v21, %v746_v21 }
 0x1c1   : > { %v1361_v38 = vunpack.c.l.b16 %v3784_v37 }
 0x1c3   : > { %v855_v23 = vpop.f32.mrf.mxu2  ;;  %v1362_v41 = vpack.c.b16 %v1361_v38, %v1361_v38 }
 0x1c6   : > { %780 = vmax.xlane.f32.xlu2 %v779_v24 }
 0x1cb   : > { %v1012_v25 = vpop.f32.mrf.mxu2 }
 0x1cc   : > { %v1016_v28 = vsel %vm3681_vm3, -1e+09, %v1012_v25 }
 0x1cd   : > { %v1017_v30 = vsel %vm778_vm4, %v1016_v28, -inf }
 0x1ce   : > { %1018 = vmax.xlane.f32.xlu0 %v1017_v30 }
 0x1d3   : > { %v1014_v34 = vpop.f32.mrf.mxu2 }
 0x1db   : > { %v1170_v42 = vpop.f32.mrf.mxu2 }
 0x1dc   : > { %v1174_v43 = vsel %vm3681_vm3, -1e+09, %v1170_v42 }
 0x1dd   : > { %v1175_v44 = vsel %vm778_vm4, %v1174_v43, -inf }
 0x1de   : > { %1176 = vmax.xlane.f32.xlu1 %v1175_v44 }
 0x1e3   : > { %v1172_v46 = vpop.f32.mrf.mxu2 }
 0x1e6   : > { %940 = vmax.xlane.f32.xlu1 %v939_v47 }
 0x1eb   : > { %v1328_v49 = vpop.f32.mrf.mxu2 }
 0x1ec   : > { %v1332_v50 = vsel %vm3681_vm3, -1e+09, %v1328_v49 }
 0x1ed   : > { %v1333_v40 = vsel %vm778_vm4, %v1332_v50, -inf }
 0x1ee   : > { %1334 = vmax.xlane.f32.xlu2 %v1333_v40  ;;  %1098 = vmax.xlane.f32.xlu1 %v1097_v51 }
 0x1f3   : > { %v1330_v53 = vpop.f32.mrf.mxu2 }
 0x1f6   : > { %1256 = vmax.xlane.f32.xlu2 %v1255_v54 }
 0x207   : > { %1047 = vrot.lane.b32.xlu1 %v1046_v62, %s3251_s8 }
 0x20e   : > { %1205 = vrot.lane.b32.xlu2 %v1204_v57, %s3251_s8 }
 0x231   : > { %v860_v0 = vpop.xlane.xlu2 %859 }
 0x232   : > { %v861_v1 = vsub.f32 %v3687_v20, %v860_v0 }
 0x234   : > { %v862_v2 = vmul.f32 1.442695, %v861_v1 }
 0x236   : > { %3116 = vpow2.f32 %v862_v2 }
 0x239   : > { %v781_v16 = vpop.xlane.xlu2 %780 }
 0x23a   : > { %v782_v29 = vsub.f32 %v3693_v22, %v781_v16 }
 0x23c   : > { %v3758_v3 = vpop.eup %3116  ;;  %v783_v32 = vmul.f32 1.442695, %v782_v29 }
 0x23d   : > { %v864_v4 = vsel %vm778_vm4, %v3758_v3, 0.0 }
 0x23e   : > { %865 = vadd.xlane.f32.xlu0 %v864_v4 }
 0x241   : > { %v1019_v6 = vpop.xlane.xlu0 %1018 }
 0x242   : > { %v1020_v7 = vsub.f32 %v1016_v28, %v1019_v6  ;;  %v748_v28 = vpop.f32.mrf.mxu3 }
 0x244   : > { %v1021_v8 = vmul.f32 1.442695, %v1020_v7 }
 0x246   : > { %3118 = vpow2.f32 %v1021_v8 }
 0x24c   : > { %v3762_v9 = vpop.eup %3118 }
 0x24d   : > { %v1023_v11 = vsel %vm778_vm4, %v3762_v9, 0.0 }
 0x24e   : > { %1024 = vadd.xlane.f32.xlu2 %v1023_v11 }
 0x251   : > { %v1177_v13 = vpop.xlane.xlu1 %1176 }
 0x252   : > { %v1178_v14 = vsub.f32 %v1174_v43, %v1177_v13  ;;  %888 = vrot.lane.b32.xlu0 %v887_v12, %s3251_s8 }
 0x254   : > { %v1179_v15 = vmul.f32 1.442695, %v1178_v14 }
 0x256   : > { %3120 = vpow2.f32 %v1179_v15 }
 0x259   : > { %v941_v17 = vpop.xlane.xlu1 %940 }
 0x25a   : > { %v942_v18 = vsub.f32 %v938_v45, %v941_v17 }
 0x25c   : > { %v3768_v19 = vpop.eup %3120  ;;  %v943_v20 = vmul.f32 1.442695, %v942_v18 }
 0x25d   : > { %v1181_v5 = vsel %vm778_vm4, %v3768_v19, 0.0 }
 0x25e   : > { %3122 = vpow2.f32 %v943_v20  ;;  %1182 = vadd.xlane.f32.xlu2 %v1181_v5 }
 0x261   : > { %v1335_v23 = vpop.xlane.xlu2 %1334  ;;  %v1099_v33 = vpop.xlane.xlu1 %1098 }
 0x262   : > { %v1336_v24 = vsub.f32 %v1332_v50, %v1335_v23  ;;  %v1100_v34 = vsub.f32 %v3736_v48, %v1099_v33 }
 0x264   : > { %v3772_v25 = vpop.eup %3122  ;;  %v1337_v26 = vmul.f32 1.442695, %v1336_v24  ;;  %v1101_v35 = vmul.f32 1.442695, %v1100_v34 }
 0x265   : > { %v945_v27 = vsel %vm778_vm4, %v3772_v25, 0.0 }
 0x266   : > { %3124 = vpow2.f32 %v1337_v26  ;;  %946 = vadd.xlane.f32.xlu1 %v945_v27 }
 0x267   : > { %3126 = vpow2.f32 %v783_v32 }
 0x268   : > { %3128 = vpow2.f32 %v1101_v35 }
 0x269   : > { %v1257_v43 = vpop.xlane.xlu2 %1256 }
 0x26a   : > { %v1258_v44 = vsub.f32 %v3745_v52, %v1257_v43 }
 0x26c   : > { %v3777_v30 = vpop.eup %3124  ;;  %v1259_v45 = vmul.f32 1.442695, %v1258_v44 }
 0x26d   : > { %v1339_v31 = vsel %vm778_vm4, %v3777_v30, 0.0  ;;  %v3782_v36 = vpop.eup %3126 }
 0x26e   : > { %1340 = vadd.xlane.f32.xlu2 %v1339_v31  ;;  %v785_v22 = vsel %vm778_vm4, %v3782_v36, 0.0  ;;  %v3789_v39 = vpop.eup %3128  ;;  %3130 = vpow2.f32 %v1259_v45 }
 0x26f   : > { %v1103_v42 = vsel %vm778_vm4, %v3789_v39, 0.0 }
 0x271   : > { %v1206_v50 = vpop.permute.xlu2 %1205 }
 0x272   : > { %v1211_v6 = vsel %vm808_vm1, %v1206_v50, 0 }
 0x274   : > { %v3795_v46 = vpop.eup %3130 }
 0x275   : > { %v1261_v47 = vsel %vm778_vm4, %v3795_v46, 0.0 }
 0x279   : > { %v1048_v60 = vpop.permute.xlu1 %1047 }
 0x27a   : > { %v1053_v0 = vsel %vm808_vm1, %v1048_v60, 0 }
 0x27c   : > { %786 = vadd.xlane.f32.xlu0 %v785_v22 }
 0x284   : > { %1104 = vadd.xlane.f32.xlu0 %v1103_v42 }
 0x286   : > { %1363 = vrot.lane.b32.xlu2 %v1362_v41, %s3251_s8 }
 0x2af   : > { %1262 = vadd.xlane.f32.xlu2 %v1261_v47 }
 0x2b1   : > { %v866_v48 = vpop.xlane.xlu0 %865 }
 0x2b2   : > { %3132 = vrcp.f32 %v866_v48  ;;  %v878_v53 = vand.u32 2147483648, %v866_v48  ;;  %v876_v52 = vand.u32 2147483647, %v866_v48  ;;  %vm872_vm6 = vweird.f32 %v866_v48 }
 0x2b4   : > { %v879_v57 = vor.u32 1.1754944e-38, %v878_v53  ;;  %vm877_vm8 = vcmp.eq.f32.partialorder %v876_v52, 8.507059e+37 }
 0x2b8   : > { %v3133_v49 = vpop.eup %3132 }
 0x2b9   : > { %v868_v40 = vmul.f32 %v3133_v49, %v866_v48  ;;  %vm873_vm5 = vweird.f32 %v3133_v49 }
 0x2ba   : > { %vm874_vm7 = vmor %vm872_vm6, %vm873_vm5 }
 0x2bb   : > { %v869_v51 = vsub.f32 1.0, %v868_v40 }
 0x2bd   : > { %v870_v54 = vmul.f32 %v3133_v49, %v869_v51 }
 0x2bf   : > { %v871_v56 = vadd.f32 %v3133_v49, %v870_v54 }
 0x2c1   : > { %v875_v58 = vsel %vm874_vm7, %v3133_v49, %v871_v56  ;;  %v1025_v59 = vpop.xlane.xlu2 %1024 }
 0x2c2   : > { %v880_v61 = vsel %vm877_vm8, %v879_v57, %v875_v58  ;;  %3134 = vrcp.f32 %v1025_v59  ;;  %v1037_v8 = vand.u32 2147483648, %v1025_v59  ;;  %v1035_v11 = vand.u32 2147483647, %v1025_v59 }
 0x2c3   : > { %v881_v62 = vmul.f32 %v3758_v3, %v880_v61  ;;  %vm1031_vm10 = vweird.f32 %v1025_v59 }
 0x2c4   : > { %v889_v63 = vpop.permute.xlu0 %888  ;;  %v1038_v13 = vor.u32 1.1754944e-38, %v1037_v8  ;;  %vm1036_vm12 = vcmp.eq.f32.partialorder %v1035_v11, 8.507059e+37 }
 0x2c5   : > { %v894_v1 = vsel %vm808_vm1, %v889_v63, 0  ;;  %2587 = vst.msk [vmem:[%s3806_s20 + $0x8] sm:$0xff] %vm778_vm4, %v881_v62  ;;  %v884_v2 = vpack.c.bf16 %v881_v62, %v881_v62 }
 0x2c6   : > { %903 = vmatpush.bf16.msrb.mxu3 %v894_v1 }
 0x2c8   : > { %v3135_v4 = vpop.eup %3134 }
 0x2c9   : > { %v1027_v7 = vmul.f32 %v3135_v4, %v1025_v59  ;;  %2588 = vmatmul.msk.bf16.vlgmr.msrb.gmra.mxu3 %vm778_vm4, %v884_v2  ;;  %vm1032_vm9 = vweird.f32 %v3135_v4 }
 0x2ca   : > { %1062 = vmatpush.bf16.msra.mxu3 %v1053_v0  ;;  %vm1033_vm11 = vmor %vm1031_vm10, %vm1032_vm9 }
 0x2cb   : > { %v1028_v3 = vsub.f32 1.0, %v1027_v7 }
 0x2cd   : > { %v1029_v10 = vmul.f32 %v3135_v4, %v1028_v3 }
 0x2ce   : > { %1220 = vmatpush.bf16.msrb.mxu3 %v1211_v6 }
 0x2cf   : > { %v1030_v12 = vadd.f32 %v3135_v4, %v1029_v10 }
 0x2d1   : > { %v1034_v14 = vsel %vm1033_vm11, %v3135_v4, %v1030_v12  ;;  %v1183_v15 = vpop.xlane.xlu2 %1182 }
 0x2d2   : > { %v1039_v16 = vsel %vm1036_vm12, %v1038_v13, %v1034_v14  ;;  %3136 = vrcp.f32 %v1183_v15  ;;  %v1195_v24 = vand.u32 2147483648, %v1183_v15  ;;  %v1193_v27 = vand.u32 2147483647, %v1183_v15 }
 0x2d3   : > { %v1040_v17 = vmul.f32 %v3762_v9, %v1039_v16  ;;  %vm1189_vm14 = vweird.f32 %v1183_v15 }
 0x2d4   : > { %v1196_v9 = vor.u32 1.1754944e-38, %v1195_v24  ;;  %vm1194_vm2 = vcmp.eq.f32.partialorder %v1193_v27, 8.507059e+37  ;;  %v1286_v27 = vsel %vm808_vm1, %v3784_v37, 0 }
 0x2d5   : > { %2593 = vst.msk [vmem:[%s3806_s20 + $0x18] sm:$0xff] %vm778_vm4, %v1040_v17  ;;  %v1043_v18 = vpack.c.bf16 %v1040_v17, %v1040_v17 }
 0x2d8   : > { %v3137_v20 = vpop.eup %3136 }
 0x2d9   : > { %v1185_v5 = vmul.f32 %v3137_v20, %v1183_v15  ;;  %v947_v21 = vpop.xlane.xlu1 %946  ;;  %2594 = vmatmul.msk.bf16.vlgmr.msra.gmra.mxu3 %vm778_vm4, %v1043_v18  ;;  %vm1190_vm13 = vweird.f32 %v3137_v20 }
 0x2da   : > { %3138 = vrcp.f32 %v947_v21  ;;  %vm1191_vm15 = vmor %vm1189_vm14, %vm1190_vm13  ;;  %v959_v38 = vand.u32 2147483648, %v947_v21  ;;  %v957_v42 = vand.u32 2147483647, %v947_v21  ;;  %vm953_vm5 = vweird.f32 %v947_v21 }
 0x2db   : > { %v1186_v23 = vsub.f32 1.0, %v1185_v5 }
 0x2dc   : > { %v960_v47 = vor.u32 1.1754944e-38, %v959_v38  ;;  %vm958_vm7 = vcmp.eq.f32.partialorder %v957_v42, 8.507059e+37 }
 0x2dd   : > { %v1187_v26 = vmul.f32 %v3137_v20, %v1186_v23 }
 0x2df   : > { %v1188_v28 = vadd.f32 %v3137_v20, %v1187_v26 }
 0x2e0   : > { %v3139_v29 = vpop.eup %3138 }
 0x2e1   : > { %v1192_v31 = vsel %vm1191_vm15, %v3137_v20, %v1188_v28  ;;  %v949_v32 = vmul.f32 %v3139_v29, %v947_v21  ;;  %v1341_v33 = vpop.xlane.xlu2 %1340  ;;  %vm954_vm3 = vweird.f32 %v3139_v29  ;;  %v1128_v20 = vsel %vm808_vm1, %v3751_v55, 0 }
 0x2e2   : > { %v1197_v34 = vsel %vm1194_vm2, %v1196_v9, %v1192_v31  ;;  %3140 = vrcp.f32 %v1341_v33  ;;  %vm955_vm6 = vmor %vm953_vm5, %vm954_vm3  ;;  %v1353_v54 = vand.u32 2147483648, %v1341_v33  ;;  %v1351_v56 = vand.u32 2147483647, %v1341_v33 }
 0x2e3   : > { %v1198_v35 = vmul.f32 %v3768_v19, %v1197_v34  ;;  %v950_v22 = vsub.f32 1.0, %v949_v32  ;;  %vm1347_vm9 = vweird.f32 %v1341_v33 }
 0x2e4   : > { %v1354_v59 = vor.u32 1.1754944e-38, %v1353_v54  ;;  %vm1352_vm11 = vcmp.eq.f32.partialorder %v1351_v56, 8.507059e+37 }
 0x2e5   : > { %v951_v41 = vmul.f32 %v3139_v29, %v950_v22  ;;  %2599 = vst.msk [vmem:[%s3806_s20 + $0x28] sm:$0xff] %vm778_vm4, %v1198_v35  ;;  %v1201_v44 = vpack.c.bf16 %v1198_v35, %v1198_v35 }
 0x2e7   : > { %v952_v43 = vadd.f32 %v3139_v29, %v951_v41 }
 0x2e8   : > { %v3141_v45 = vpop.eup %3140 }
 0x2e9   : > { %v956_v48 = vsel %vm955_vm6, %v3139_v29, %v952_v43  ;;  %v1343_v49 = vmul.f32 %v3141_v45, %v1341_v33  ;;  %2600 = vmatmul.msk.bf16.vlgmr.msrb.gmra.mxu3 %vm778_vm4, %v1201_v44  ;;  %v1364_v19 = vpop.permute.xlu2 %1363  ;;  %vm1348_vm8 = vweird.f32 %v3141_v45 }
 0x2ea   : > { %v961_v50 = vsel %vm958_vm7, %v960_v47, %v956_v48  ;;  %v1369_v40 = vsel %vm808_vm1, %v1364_v19, 0  ;;  %vm1349_vm10 = vmor %vm1347_vm9, %vm1348_vm8 }
 0x2eb   : > { %v962_v51 = vmul.f32 %v3772_v25, %v961_v50  ;;  %v1344_v53 = vsub.f32 1.0, %v1343_v49  ;;  %1378 = vmatpush.bf16.msra.mxu3 %v1369_v40 }
 0x2ed   : > { %v1345_v52 = vmul.f32 %v3141_v45, %v1344_v53  ;;  %2590 = vst.msk [vmem:[%s3806_s20 + $0x10] sm:$0xff] %vm778_vm4, %v962_v51  ;;  %v965_v26 = vpack.c.bf16 %v962_v51, %v962_v51 }
 0x2ef   : > { %v1346_v57 = vadd.f32 %v3141_v45, %v1345_v52  ;;  %v787_v58 = vpop.xlane.xlu0 %786 }
 0x2f0   : > { %3142 = vrcp.f32 %v787_v58  ;;  %v799_v4 = vand.u32 2147483648, %v787_v58  ;;  %v797_v7 = vand.u32 2147483647, %v787_v58  ;;  %vm793_vm13 = vweird.f32 %v787_v58 }
 0x2f1   : > { %v1350_v60 = vsel %vm1349_vm10, %v3141_v45, %v1346_v57  ;;  %vm914_vm10 = vcmask 1043968  }
 0x2f2   : > { %v1355_v61 = vsel %vm1352_vm11, %v1354_v59, %v1350_v60  ;;  %vm798_vm15 = vcmp.eq.f32.partialorder %v797_v7, 8.507059e+37  ;;  %v2993_v59 = vld [vmem:[%s4214_s3 + $0x38] sm:$0xff]  ;;  %v3000_v7 = vld [vmem:[%s4214_s3 + $0x70] sm:$0xff] }
 0x2f3   : > { %v1356_v25 = vmul.f32 %v3777_v30, %v1355_v61  ;;  %v800_v30 = vor.u32 1.1754944e-38, %v799_v4  ;;  %v3001_v60 = vld [vmem:[%s4214_s3 + $0x78] sm:$0xff]  ;;  %1662 = vmatpush.bf16.msrb.mxu0 %v2993_v59 }
 0x2f4   : > { %v3009_v61 = vld [vmem:[%s4214_s3 + $0xb8] sm:$0xff] }
 0x2f5   : > { %2605 = vst.msk [vmem:[%s3806_s20 + $0x38] sm:$0xff] %vm778_vm4, %v1356_v25  ;;  %v1359_v1 = vpack.c.bf16 %v1356_v25, %v1356_v25  ;;  %v3017_v25 = vld [vmem:[%s4214_s3 + $0xf8] sm:$0xff]  ;;  %1688 = vmatpush.bf16.msrb.mxu2 %v3009_v61  ;;  %v3253_v61 = vmov 64.0  }
 0x2f6   : > { %v3143_v62 = vpop.eup %3142  ;;  %1701 = vmatpush.bf16.msrb.mxu3 %v3017_v25 }
 0x2f7   : > { %v789_v63 = vmul.f32 %v3143_v62, %v787_v58  ;;  %v1105_v0 = vpop.xlane.xlu0 %1104  ;;  %vm794_vm12 = vweird.f32 %v3143_v62 }
 0x2f8   : > { %3144 = vrcp.f32 %v1105_v0  ;;  %vm795_vm14 = vmor %vm793_vm13, %vm794_vm12  ;;  %v1117_v15 = vand.u32 2147483648, %v1105_v0  ;;  %v1115_v17 = vand.u32 2147483647, %v1105_v0  ;;  %vm1111_vm3 = vweird.f32 %v1105_v0 }
 0x2f9   : > { %v790_v2 = vsub.f32 1.0, %v789_v63  ;;  %2606 = vmatmul.msk.bf16.vlgmr.msra.gmra.mxu3 %vm778_vm4, %v1359_v1 }
 0x2fa   : > { %v1118_v21 = vor.u32 1.1754944e-38, %v1117_v15  ;;  %vm1116_vm6 = vcmp.eq.f32.partialorder %v1115_v17, 8.507059e+37  ;;  %v3006_v15 = vld [vmem:[%s4214_s3 + $0xa0] sm:$0xff]  ;;  %v2989_v17 = vld [vmem:[%s4214_s3 + $0x18] sm:$0xff] }
 0x2fb   : > { %v791_v6 = vmul.f32 %v3143_v62, %v790_v2 }
 0x2fd   : > { %v792_v3 = vadd.f32 %v3143_v62, %v791_v6  ;;  %v2992_v6 = vld [vmem:[%s4214_s3 + $0x30] sm:$0xff] }
 0x2fe   : > { %v3145_v8 = vpop.eup %3144  ;;  %1663 = vmatpush.bf16.msrb.mxu0 %v2992_v6 }
 0x2ff   : > { %v796_v10 = vsel %vm795_vm14, %v3143_v62, %v792_v3  ;;  %v1107_v11 = vmul.f32 %v3145_v8, %v1105_v0  ;;  %vm1112_vm2 = vweird.f32 %v3145_v8  ;;  %v3008_v3 = vld [vmem:[%s4214_s3 + $0xb0] sm:$0xff] }
 0x300   : > { %v801_v12 = vsel %vm798_vm15, %v800_v30, %v796_v10  ;;  %vm1113_vm5 = vmor %vm1111_vm3, %vm1112_vm2  ;;  %v2991_v30 = vld [vmem:[%s4214_s3 + $0x28] sm:$0xff]  ;;  %1689 = vmatpush.bf16.msrb.mxu2 %v3008_v3 }
 0x301   : > { %v802_v13 = vmul.f32 %v3782_v36, %v801_v12  ;;  %v1108_v14 = vsub.f32 1.0, %v1107_v11  ;;  %v2999_v10 = vld [vmem:[%s4214_s3 + $0x68] sm:$0xff] }
 0x302   : > { %v3007_v11 = vld [vmem:[%s4214_s3 + $0xa8] sm:$0xff]  ;;  %1664 = vmatpush.bf16.msrb.mxu0 %v2991_v30  ;;  %v2785_v30 = vld [vmem:[%s4215_s4 + $0x60] sm:$0xf] }
 0x303   : > { %v1109_v16 = vmul.f32 %v3145_v8, %v1108_v14  ;;  %v804_v18 = vpack.c.bf16 %v802_v13, %v802_v13  ;;  %803 = vst.msk [vmem:[%s3806_s20] sm:$0xff] %vm778_vm4, %v802_v13  ;;  %v3015_v12 = vld [vmem:[%s4214_s3 + $0xe8] sm:$0xff]  ;;  %v2990_v13 = vld [vmem:[%s4214_s3 + $0x20] sm:$0xff] }
 0x304   : > { %1690 = vmatpush.bf16.msrb.mxu2 %v3007_v11  ;;  %v2998_v14 = vld [vmem:[%s4214_s3 + $0x60] sm:$0xff] }
 0x305   : > { %v1110_v5 = vadd.f32 %v3145_v8, %v1109_v16  ;;  %2585 = vmatmul.msk.bf16.vlgmr.msrb.gmra.mxu1 %vm778_vm4, %v804_v18  ;;  %v3014_v16 = vld [vmem:[%s4214_s3 + $0xe0] sm:$0xff]  ;;  %v2997_v18 = vld [vmem:[%s4214_s3 + $0x58] sm:$0xff] }
 0x306   : > { %1137 = vmatpush.bf16.msrb.mxu1 %v1128_v20  ;;  %1665 = vmatpush.bf16.msrb.mxu0 %v2990_v13  ;;  %v3005_v20 = vld [vmem:[%s4214_s3 + $0x98] sm:$0xff]  ;;  %v3030_v11 = vld [vmem:[%s4215_s4 + $0x64] sm:$0xf]  ;;  %v2787_v13 = vld [vmem:[%s4215_s4 + $0x70] sm:$0xf0] }
 0x307   : > { %v1114_v36 = vsel %vm1113_vm5, %v3145_v8, %v1110_v5  ;;  %v3016_v8 = vld [vmem:[%s4214_s3 + $0xf0] sm:$0xff]  ;;  %v3013_v5 = vld [vmem:[%s4214_s3 + $0xd8] sm:$0xff] }
 0x308   : > { %v1119_v23 = vsel %vm1116_vm6, %v1118_v21, %v1114_v36  ;;  %1702 = vmatpush.bf16.msrb.mxu3 %v3016_v8  ;;  %1691 = vmatpush.bf16.msrb.mxu2 %v3006_v15  ;;  %v2988_v21 = vld [vmem:[%s4214_s3 + $0x10] sm:$0xff]  ;;  %v3033_v15 = vld [vmem:[%s4215_s4 + $0x74] sm:$0xf0] }
 0x309   : > { %v1120_v24 = vmul.f32 %v3789_v39, %v1119_v23  ;;  %v2996_v36 = vld [vmem:[%s4214_s3 + $0x50] sm:$0xff] }
 0x30a   : > { %1666 = vmatpush.bf16.msrb.mxu0 %v2989_v17  ;;  %v3004_v23 = vld [vmem:[%s4214_s3 + $0x90] sm:$0xff] }
 0x30b   : > { %2596 = vst.msk [vmem:[%s3806_s20 + $0x20] sm:$0xff] %vm778_vm4, %v1120_v24  ;;  %v1123_v28 = vpack.c.bf16 %v1120_v24, %v1120_v24  ;;  %v3012_v24 = vld [vmem:[%s4214_s3 + $0xd0] sm:$0xff] }
 0x30c   : > { %1703 = vmatpush.bf16.msrb.mxu3 %v3015_v12  ;;  %1692 = vmatpush.bf16.msrb.mxu2 %v3005_v20  ;;  %v2795_v20 = vld [vmem:[%s4215_s4 + $0x78] sm:$0xf0] }
 0x30e   : > { %1667 = vmatpush.bf16.msrb.mxu0 %v2988_v21  ;;  %v2769_v21 = vld [vmem:[%s4215_s4 + $0x40] sm:$0xf] }
 0x310   : > { %1704 = vmatpush.bf16.msrb.mxu3 %v3014_v16  ;;  %1693 = vmatpush.bf16.msrb.mxu2 %v3004_v23  ;;  %v2790_v16 = vor.u32 %v3030_v11, %v2787_v13  ;;  %v3026_v23 = vld [vmem:[%s4215_s4 + $0x44] sm:$0xf] }
 0x311   : > { %v3046_v11 = vld [vmem:[%s4216_s5 + $0x60] sm:$0xff] }
 0x312   : > { %v3062_v13 = vld [vmem:[%s4216_s5 + $0xe0] sm:$0xff] }
 0x314   : > { %1705 = vmatpush.bf16.msrb.mxu3 %v3013_v5 }
 0x315   : > { %2591 = vmatmul.msk.bf16.vlgmr.msra.gmra.mxu1 %vm778_vm4, %v965_v26  ;;  %v2987_v26 = vld [vmem:[%s4214_s3 + $0x8] sm:$0xff] }
 0x316   : > { %1295 = vmatpush.bf16.msra.mxu1 %v1286_v27  ;;  %v2995_v27 = vld [vmem:[%s4214_s3 + $0x48] sm:$0xff]  ;;  %1668 = vmatpush.bf16.msrb.mxu0 %v2987_v26  ;;  %v2771_v26 = vld [vmem:[%s4215_s4 + $0x50] sm:$0xf0] }
 0x318   : > { %1706 = vmatpush.bf16.msrb.mxu3 %v3012_v24 }
 0x322   : > { %v1263_v55 = vpop.xlane.xlu2 %1262 }
 0x323   : > { %3146 = vrcp.f32 %v1263_v55  ;;  %v1275_v32 = vand.u32 2147483648, %v1263_v55  ;;  %v1273_v33 = vand.u32 2147483647, %v1263_v55  ;;  %vm1269_vm8 = vweird.f32 %v1263_v55 }
 0x324   : > { %3148 = vrcp.f32 %v3253_v61  ;;  %v3040_v61 = vld [vmem:[%s4216_s5 + $0x30] sm:$0xff] }
 0x325   : > { %2597 = vmatmul.msk.bf16.vlgmr.msrb.gmra.mxu1 %vm778_vm4, %v1123_v28  ;;  %v1276_v37 = vor.u32 1.1754944e-38, %v1275_v32  ;;  %vm1274_vm1 = vcmp.eq.f32.partialorder %v1273_v33, 8.507059e+37  ;;  %v3011_v28 = vld [vmem:[%s4214_s3 + $0xc8] sm:$0xff]  ;;  %v3010_v32 = vld [vmem:[%s4214_s3 + $0xc0] sm:$0xff] }
 0x326   : > { %1675 = vmatpush.bf16.msrb.mxu1 %v3001_v60  ;;  %1707 = vmatpush.bf16.msrb.mxu3 %v3011_v28  ;;  %v2774_v28 = vor.u32 %v3026_v23, %v2771_v26  ;;  %v3035_v26 = vld [vmem:[%s4216_s5 + $0x8] sm:$0xff] }
 0x329   : > { %v3147_v29 = vpop.eup %3146 }
 0x32a   : > { %v1265_v9 = vmul.f32 %v3147_v29, %v1263_v55  ;;  %vm1270_vm7 = vweird.f32 %v3147_v29  ;;  %1676 = vmatpush.bf16.msrb.mxu1 %v3000_v7  ;;  %v3003_v55 = vld [vmem:[%s4214_s3 + $0x88] sm:$0xff]  ;;  %1708 = vmatpush.bf16.msrb.mxu3 %v3010_v32  ;;  %v3149_v25 = vpop.eup %3148 }
 0x32b   : > { %vm1271_vm9 = vmor %vm1269_vm8, %vm1270_vm7  ;;  %1694 = vmatpush.bf16.msrb.mxu2 %v3003_v55  ;;  %vm1722_vm11 = vweird.f32 %v3149_v25  ;;  %v3029_v55 = vld [vmem:[%s4215_s4 + $0x54] sm:$0xf0] }
 0x32c   : > { %v1266_v31 = vsub.f32 1.0, %v1265_v9  ;;  %v2994_v9 = vld [vmem:[%s4214_s3 + $0x40] sm:$0xff] }
 0x32e   : > { %v1267_v39 = vmul.f32 %v3147_v29, %v1266_v31  ;;  %1677 = vmatpush.bf16.msrb.mxu1 %v2999_v10  ;;  %v3002_v31 = vld [vmem:[%s4214_s3 + $0x80] sm:$0xff]  ;;  %v3032_v10 = vld [vmem:[%s4215_s4 + $0x6c] sm:$0xf0] }
 0x32f   : > { %1695 = vmatpush.bf16.msrb.mxu2 %v3002_v31  ;;  %v2786_v12 = vor.u32 %v3032_v10, %v2785_v30  ;;  %v2779_v31 = vld [vmem:[%s4215_s4 + $0x58] sm:$0xf0]  ;;  %v3063_v30 = vld [vmem:[%s4216_s5 + $0xe8] sm:$0xff]  ;;  %v3038_v10 = vld [vmem:[%s4216_s5 + $0x20] sm:$0xff] }
 0x330   : > { %v1268_v34 = vadd.f32 %v3147_v29, %v1267_v39 }
 0x332   : > { %v1272_v35 = vsel %vm1271_vm9, %v3147_v29, %v1268_v34  ;;  %1678 = vmatpush.bf16.msrb.mxu1 %v2998_v14  ;;  %v2986_v29 = vld [vmem:[%s4214_s3] sm:$0xff]  ;;  %v2793_v14 = vld [vmem:[%s4215_s4 + $0x68] sm:$0xf] }
 0x333   : > { %v1277_v22 = vsel %vm1274_vm1, %v1276_v37, %v1272_v35  ;;  %1669 = vmatpush.bf16.msrb.mxu0 %v2986_v29  ;;  %v2794_v17 = vor.u32 %v3033_v15, %v2793_v14  ;;  %v3037_v14 = vld [vmem:[%s4216_s5 + $0x18] sm:$0xff] }
 0x334   : > { %v1278_v38 = vmul.f32 %v3795_v46, %v1277_v22  ;;  %v3045_v15 = vld [vmem:[%s4216_s5 + $0x58] sm:$0xff] }
 0x335   : > { %1873 = vmatpush.bf16.msra.mxu2 %v2794_v17  ;;  %v3053_v17 = vld [vmem:[%s4216_s5 + $0x98] sm:$0xff] }
 0x336   : > { %v1281_v41 = vpack.c.bf16 %v1278_v38, %v1278_v38  ;;  %2602 = vst.msk [vmem:[%s3806_s20 + $0x30] sm:$0xff] %vm778_vm4, %v1278_v38  ;;  %1679 = vmatpush.bf16.msrb.mxu1 %v2997_v18  ;;  %v3031_v18 = vld [vmem:[%s4215_s4 + $0x6c] sm:$0xf]  ;;  %s3175_s20 = scalar_lea.hbm %s4218_s7, 128 }
 0x337   : > { %1847 = vmatpush.bf16.msra.mxu0 %v2786_v12  ;;  %v2798_v5 = vor.u32 %v3031_v18, %v2795_v20  ;;  %v3054_v12 = vld [vmem:[%s4216_s5 + $0xa0] sm:$0xff]  ;;  %v3061_v18 = vld [vmem:[%s4216_s5 + $0xd8] sm:$0xff] }
 0x338   : > { %2603 = vmatmul.msk.bf16.vlgmr.msra.gmra.mxu1 %vm778_vm4, %v1281_v41  ;;  %vm826_vm4 = vcmask 519168  }
 0x339   : > { %1886 = vmatpush.bf16.msra.mxu3 %v2798_v5 }
 0x33a   : > { %1680 = vmatpush.bf16.msrb.mxu1 %v2996_v36  ;;  %v3028_v36 = vld [vmem:[%s4215_s4 + $0x4c] sm:$0xf0] }
 0x33b   : > { %v2770_v24 = vor.u32 %v3028_v36, %v2769_v21  ;;  %v3036_v21 = vld [vmem:[%s4216_s5 + $0x10] sm:$0xff] }
 0x33c   : > { %v3044_v36 = vld [vmem:[%s4216_s5 + $0x50] sm:$0xff] }
 0x33d   : > { %1848 = vmatpush.bf16.msra.mxu0 %v2770_v24 }
 0x33e   : > { %1681 = vmatpush.bf16.msrb.mxu1 %v2995_v27  ;;  %v2777_v27 = vld [vmem:[%s4215_s4 + $0x48] sm:$0xf] }
 0x33f   : > { %v2778_v29 = vor.u32 %v3029_v55, %v2777_v27  ;;  %v3043_v27 = vld [vmem:[%s4216_s5 + $0x48] sm:$0xff] }
 0x341   : > { %1874 = vmatpush.bf16.msra.mxu2 %v2778_v29 }
 0x342   : > { %1682 = vmatpush.bf16.msrb.mxu1 %v2994_v9  ;;  %v3027_v9 = vld [vmem:[%s4215_s4 + $0x4c] sm:$0xf] }
 0x343   : > { %v2782_v32 = vor.u32 %v3027_v9, %v2779_v31  ;;  %v3052_v31 = vld [vmem:[%s4216_s5 + $0x90] sm:$0xff] }
 0x345   : > { %1887 = vmatpush.bf16.msra.mxu3 %v2782_v32  ;;  %v3060_v32 = vld [vmem:[%s4216_s5 + $0xd0] sm:$0xff] }
 0x346   : > { %1860 = vmatpush.bf16.msra.mxu1 %v2790_v16 }
 0x34a   : > { %1861 = vmatpush.bf16.msra.mxu1 %v2774_v28 }
 0x34c   : > { %v905_v42 = vpop.f32.mrf.mxu3 }
 0x34d   : > { %v909_v19 = vpack.c.bf16 %v905_v42, %v905_v42 }
 0x354   : > { %v907_v43 = vpop.f32.mrf.mxu3 }
 0x35c   : > { %v1064_v44 = vpop.f32.mrf.mxu3 }
 0x35d   : > { %v1068_v40 = vpack.c.bf16 %v1064_v44, %v1064_v44 }
 0x364   : > { %v1066_v45 = vpop.f32.mrf.mxu3 }
 0x36c   : > { %v1222_v47 = vpop.f32.mrf.mxu3 }
 0x36d   : > { %v1226_v48 = vpack.c.bf16 %v1222_v47, %v1222_v47 }
 0x36f   : > { %1228 = vrot.lane.b32.xlu0 %v1226_v48, %s3251_s8 }
 0x374   : > { %v1224_v49 = vpop.f32.mrf.mxu3 }
 0x377   : > { %911 = vrot.lane.b32.xlu0 %v909_v19, %s3251_s8 }
 0x37c   : > { %v1380_v50 = vpop.f32.mrf.mxu3 }
 0x37d   : > { %v1384_v46 = vpack.c.bf16 %v1380_v50, %v1380_v50  ;;  %v3154_v50 = vld [vmem:[%s3409_s14] sm:$0xff]  ;;  %s2265_s14 = scalar_lea.hbm %s4218_s7, %s3066_s13 }
 0x37e   : > { %s2268_s18 = sshll.u32 %s2265_s14, 4  ;;  %s2269_s18 = int_to_ptr.hbm [resolvable:$true] %s2268_s18 }
 0x37f   : > { %1070 = vrot.lane.b32.xlu0 %v1068_v40, %s3251_s8  ;;  %1386 = vrot.lane.b32.xlu1 %v1384_v46, %s3251_s8  ;;  %s3169_s22 = sshra.s32 %s2269_s18, 4  ;;  %s3170_s22 = int_to_ptr.hbm [resolvable:$true] %s3169_s22 }
 0x380   : > { %s3171_s23 = scalar_lea.hbm %s3170_s22, 64  ;;  %p3176_p0 = scmp.lt.s32.totalorder %s3170_s22, %s4218_s7 }
 0x381   : > { %p3172_p11 = scmp.ne.s32.totalorder %s3170_s22, %s3171_s23  ;;  %p3177_p1 = scmp.lt.s32.totalorder %s3175_s20, %s3171_s23 }
 0x382   : > { %v821_v51 = vpop.f32.mrf.mxu1 }
 0x383   : > { %v825_v53 = vpack.c.bf16 %v821_v51, %v821_v51  ;;  %p3173_p12 = pnand %p3172_p11, %p3334_p5  ;;  %p3178_p2 = por %p3177_p1, %p3176_p0 }
 0x384   : > { %v1382_v54 = vpop.f32.mrf.mxu3 }
 0x385   : > { %827 = vst.msk [vmem:[#allocation2] sm:$0xf] %vm826_vm4, %v825_v53  ;;  %p3174_p13 = pneg %p3173_p12 }
 0x387   : > { %p3179_p3 = pnand %p3178_p2, %p3174_p13 }
 0x38a   : > { %v823_v52 = vpop.f32.mrf.mxu1 }
 0x392   : > { %v981_v56 = vpop.f32.mrf.mxu1 }
 0x393   : > { %v985_v57 = vpack.c.bf16 %v981_v56, %v981_v56 }
 0x395   : > { %986 = vst.msk [vmem:[#allocation2 + $0x4] sm:$0xf] %vm826_vm4, %v985_v57 }
 0x39a   : > { %v983_v58 = vpop.f32.mrf.mxu1 }
 0x3a2   : > { %v1139_v62 = vpop.f32.mrf.mxu1 }
 0x3a3   : > { %v1143_v63 = vpack.c.bf16 %v1139_v62, %v1139_v62  ;;  %v1718_v62 = vmul.f32 64.0, %v3149_v25 }
 0x3a5   : > { %1144 = vst.msk [vmem:[#allocation2 + $0x8] sm:$0xf] %vm826_vm4, %v1143_v63  ;;  %v1719_v63 = vsub.f32 1.0, %v1718_v62  ;;  %v3056_v62 = vld [vmem:[%s4216_s5 + $0xb0] sm:$0xff] }
 0x3aa   : > { %v1141_v0 = vpop.f32.mrf.mxu1 }
 0x3ab   : > { %v1720_v0 = vmul.f32 %v3149_v25, %v1719_v63  ;;  %v3064_v63 = vld [vmem:[%s4216_s5 + $0xf0] sm:$0xff] }
 0x3b5   : > { %v1297_v1 = vpop.f32.mrf.mxu1 }
 0x3b6   : > { %v1301_v2 = vpack.c.bf16 %v1297_v1, %v1297_v1  ;;  %v1721_v1 = vadd.f32 %v3149_v25, %v1720_v0 }
 0x3b8   : > { %1302 = vst.msk [vmem:[#allocation2 + $0xc] sm:$0xf] %vm826_vm4, %v1301_v2  ;;  %v3951_v2 = vsel %vm1722_vm11, %v3149_v25, %v1721_v1  ;;  %v3048_v25 = vld [vmem:[%s4216_s5 + $0x70] sm:$0xff] }
 0x3bd   : > { %v1299_v4 = vpop.f32.mrf.mxu1 }
 0x3e1   : > { %v1229_v39 = vpop.permute.xlu0 %1228 }
 0x3e2   : > { %1231 = vst.msk [vmem:[#allocation2 + $0x8] sm:$0xf] %vm914_vm10, %v1229_v39  ;;  %v2753_v39 = vld [vmem:[%s4215_s4 + $0x20] sm:$0xf] }
 0x3e9   : > { %v912_v33 = vpop.permute.xlu0 %911 }
 0x3ea   : > { %915 = vst.msk [vmem:[#allocation2] sm:$0xf] %vm914_vm10, %v912_v33  ;;  %v3024_v33 = vld [vmem:[%s4215_s4 + $0x2c] sm:$0xf0] }
 0x3f1   : > { %v1071_v34 = vpop.permute.xlu0 %1070  ;;  %v1387_v37 = vpop.permute.xlu1 %1386 }
 0x3f2   : > { %1073 = vst.msk [vmem:[#allocation2 + $0x4] sm:$0xf] %vm914_vm10, %v1071_v34  ;;  %v3022_v34 = vld [vmem:[%s4215_s4 + $0x24] sm:$0xf] }
 0x3f3   : > { %1389 = vst.msk [vmem:[#allocation2 + $0xc] sm:$0xf] %vm914_vm10, %v1387_v37  ;;  %v2754_v37 = vor.u32 %v3024_v33, %v2753_v39  ;;  %v3042_v39 = vld [vmem:[%s4216_s5 + $0x40] sm:$0xff]  ;;  %v3051_v33 = vld [vmem:[%s4216_s5 + $0x88] sm:$0xff] }
 0x3f5   : > { %1849 = vmatpush.bf16.msra.mxu0 %v2754_v37  ;;  %v3050_v37 = vld [vmem:[%s4216_s5 + $0x80] sm:$0xff] }
 0x3f9   : > { %v1390_v35 = vld [vmem:[#allocation2] sm:$0xff] }
 0x3fa   : > { %v1458_v22 = vunpack.c.l.b16 %v1390_v35  ;;  %v1459_v38 = vunpack.c.h.b16 %v1390_v35  ;;  %v1391_v41 = vld [vmem:[#allocation2 + $0x8] sm:$0xff]  ;;  %v2755_v35 = vld [vmem:[%s4215_s4 + $0x30] sm:$0xf0] }
 0x3fb   : > { %v1460_v42 = vunpack.c.l.b16 %v1391_v41  ;;  %v1461_v43 = vunpack.c.h.b16 %v1391_v41  ;;  %v2758_v41 = vor.u32 %v3022_v34, %v2755_v35  ;;  %v3059_v34 = vld [vmem:[%s4216_s5 + $0xc8] sm:$0xff]  ;;  %v3058_v35 = vld [vmem:[%s4216_s5 + $0xc0] sm:$0xff] }
 0x3fc   : > { %v1462_v44 = vpack.c.b16 %v1458_v22, %v1458_v22  ;;  %v1463_v45 = vpack.c.b16 %v1459_v38, %v1459_v38  ;;  %v2761_v22 = vld [vmem:[%s4215_s4 + $0x28] sm:$0xf]  ;;  %v3025_v38 = vld [vmem:[%s4215_s4 + $0x34] sm:$0xf0] }
 0x3fd   : > { %v1464_v47 = vpack.c.b16 %v1460_v42, %v1460_v42  ;;  %v1465_v48 = vpack.c.b16 %v1461_v43, %v1461_v43  ;;  %v2762_v42 = vor.u32 %v3025_v38, %v2761_v22  ;;  %v3023_v43 = vld [vmem:[%s4215_s4 + $0x2c] sm:$0xf]  ;;  %1862 = vmatpush.bf16.msra.mxu1 %v2758_v41 }
 0x3fe   : > { %1670 = vmatmul.bf16.vlgmr.msrb.gmra.mxu0 %v1462_v44  ;;  %1683 = vmatmul.bf16.vlgmr.msrb.gmra.mxu1 %v1463_v45  ;;  %v2763_v44 = vld [vmem:[%s4215_s4 + $0x38] sm:$0xf0] }
 0x3ff   : > { %1696 = vmatmul.bf16.vlgmr.msrb.gmra.mxu2 %v1464_v47  ;;  %1709 = vmatmul.bf16.vlgmr.msrb.gmra.mxu3 %v1465_v48  ;;  %v2766_v45 = vor.u32 %v3023_v43, %v2763_v44  ;;  %v2737_v47 = vld [vmem:[%s4215_s4] sm:$0xf]  ;;  %v3020_v48 = vld [vmem:[%s4215_s4 + $0xc] sm:$0xf0] }
 0x400   : > { %1875 = vmatpush.bf16.msra.mxu2 %v2762_v42 }
 0x401   : > { %1888 = vmatpush.bf16.msra.mxu3 %v2766_v45 }
 0x47b   : > { %v1671_v49 = vpop.f32.mrf.mxu0  ;;  %v1684_v19 = vpop.f32.mrf.mxu1 }
 0x47c   : > { %v1672_v40 = vadd.f32 %v3154_v50, %v1671_v49  ;;  %v3018_v49 = vld [vmem:[%s4215_s4 + $0x4] sm:$0xf]  ;;  %v2739_v50 = vld [vmem:[%s4215_s4 + $0x10] sm:$0xf0] }
 0x47e   : > { %v1685_v46 = vadd.f32 %v1684_v19, %v1672_v40  ;;  %v2738_v19 = vor.u32 %v3020_v48, %v2737_v47  ;;  %v2745_v40 = vld [vmem:[%s4215_s4 + $0x8] sm:$0xf] }
 0x480   : > { %1850 = vmatpush.bf16.msra.mxu0 %v2738_v19 }
 0x482   : > { %v1697_v51 = vpop.f32.mrf.mxu2  ;;  %v1710_v53 = vpop.f32.mrf.mxu3 }
 0x483   : > { %v1698_v54 = vadd.f32 %v1697_v51, %v1685_v46  ;;  %v1673_v52 = vpop.f32.mrf.mxu0  ;;  %v1686_v56 = vpop.f32.mrf.mxu1  ;;  %v3021_v46 = vld [vmem:[%s4215_s4 + $0x14] sm:$0xf0]  ;;  %v2742_v51 = vor.u32 %v3018_v49, %v2739_v50 }
 0x484   : > { %v2747_v52 = vld [vmem:[%s4215_s4 + $0x18] sm:$0xf0] }
 0x485   : > { %v1711_v57 = vadd.f32 %v1710_v53, %v1698_v54  ;;  %v2746_v53 = vor.u32 %v3021_v46, %v2745_v40  ;;  %v3019_v54 = vld [vmem:[%s4215_s4 + $0xc] sm:$0xf]  ;;  %1863 = vmatpush.bf16.msra.mxu1 %v2742_v51 }
 0x486   : > { %v2750_v56 = vor.u32 %v3019_v54, %v2747_v52 }
 0x487   : > { %v1714_v58 = vsel %vm590_vm0, %v1711_v57, 0.0  ;;  %1876 = vmatpush.bf16.msra.mxu2 %v2746_v53 }
 0x488   : > { %1715 = vadd.xlane.f32.xlu1 %v1714_v58  ;;  %1889 = vmatpush.bf16.msra.mxu3 %v2750_v56  ;;  %v3049_v58 = vld [vmem:[%s4216_s5 + $0x78] sm:$0xff] }
 0x489   : > { %2172 = vmatpush.bf16.msrb.mxu1 %v3049_v58 }
 0x48a   : > { %v1699_v59 = vpop.f32.mrf.mxu2  ;;  %v1712_v60 = vpop.f32.mrf.mxu3 }
 0x48b   : > { %v3057_v59 = vld [vmem:[%s4216_s5 + $0xb8] sm:$0xff] }
 0x48c   : > { %v3065_v60 = vld [vmem:[%s4216_s5 + $0xf8] sm:$0xff]  ;;  %2185 = vmatpush.bf16.msrb.mxu2 %v3057_v59 }
 0x48d   : > { %2198 = vmatpush.bf16.msrb.mxu3 %v3065_v60  ;;  %2173 = vmatpush.bf16.msrb.mxu1 %v3048_v25 }
 0x490   : > { %2186 = vmatpush.bf16.msrb.mxu2 %v3056_v62 }
 0x491   : > { %2199 = vmatpush.bf16.msrb.mxu3 %v3064_v63 }
 0x495   : > { %2200 = vmatpush.bf16.msrb.mxu3 %v3063_v30 }
 0x499   : > { %2201 = vmatpush.bf16.msrb.mxu3 %v3062_v13 }
 0x49d   : > { %2202 = vmatpush.bf16.msrb.mxu3 %v3061_v18 }
 0x4a1   : > { %2203 = vmatpush.bf16.msrb.mxu3 %v3060_v32 }
 0x4a5   : > { %2204 = vmatpush.bf16.msrb.mxu3 %v3059_v34 }
 0x4a9   : > { %2205 = vmatpush.bf16.msrb.mxu3 %v3058_v35 }
 0x4fb   : > { %v1716_v4 = vpop.xlane.xlu1 %1715 }
 0x4fc   : > { %v1724_v6 = vmul.f32 %v3951_v2, %v1716_v4  ;;  %v3039_v4 = vld [vmem:[%s4216_s5 + $0x28] sm:$0xff] }
 0x4fe   : > { %v3954_v7 = vsub.f32 %v1711_v57, %v1724_v6  ;;  %v3041_v57 = vld [vmem:[%s4216_s5 + $0x38] sm:$0xff]  ;;  %v3047_v6 = vld [vmem:[%s4216_s5 + $0x68] sm:$0xff] }
 0x4ff   : > { %2159 = vmatpush.bf16.msrb.mxu0 %v3041_v57  ;;  %2174 = vmatpush.bf16.msrb.mxu1 %v3047_v6 }
 0x500   : > { %v1726_v3 = vmul.f32 %v3954_v7, %v3954_v7 }
 0x502   : > { %v1727_v8 = vsel %vm590_vm0, %v1726_v3, 0.0 }
 0x503   : > { %1728 = vadd.xlane.f32.xlu2 %v1727_v8  ;;  %2160 = vmatpush.bf16.msrb.mxu0 %v3040_v61  ;;  %v3055_v8 = vld [vmem:[%s4216_s5 + $0xa8] sm:$0xff] }
 0x504   : > { %2187 = vmatpush.bf16.msrb.mxu2 %v3055_v8  ;;  %2175 = vmatpush.bf16.msrb.mxu1 %v3046_v11 }
 0x507   : > { %2161 = vmatpush.bf16.msrb.mxu0 %v3039_v4 }
 0x508   : > { %2188 = vmatpush.bf16.msrb.mxu2 %v3054_v12  ;;  %2176 = vmatpush.bf16.msrb.mxu1 %v3045_v15 }
 0x50b   : > { %2162 = vmatpush.bf16.msrb.mxu0 %v3038_v10 }
 0x50c   : > { %2189 = vmatpush.bf16.msrb.mxu2 %v3053_v17  ;;  %2177 = vmatpush.bf16.msrb.mxu1 %v3044_v36 }
 0x50f   : > { %2163 = vmatpush.bf16.msrb.mxu0 %v3037_v14 }
 0x510   : > { %2178 = vmatpush.bf16.msrb.mxu1 %v3043_v27  ;;  %2190 = vmatpush.bf16.msrb.mxu2 %v3052_v31 }
 0x513   : > { %2164 = vmatpush.bf16.msrb.mxu0 %v3036_v21 }
 0x514   : > { %2179 = vmatpush.bf16.msrb.mxu1 %v3042_v39  ;;  %2191 = vmatpush.bf16.msrb.mxu2 %v3051_v33 }
 0x517   : > { %2165 = vmatpush.bf16.msrb.mxu0 %v3035_v26 }
 0x518   : > { %2192 = vmatpush.bf16.msrb.mxu2 %v3050_v37 }
 0x576   : > { %v1729_v0 = vpop.xlane.xlu2 %1728 }
 0x577   : > { %v1730_v1 = vmul.f32 %v1729_v0, %v3951_v2 }
 0x579   : > { %v1731_v3 = vadd.f32 1e-05, %v1730_v1 }
 0x57b   : > { %3150 = vrsqrt.f32 %v1731_v3  ;;  %vm1738_vm13 = vweird.f32 %v1731_v3 }
 0x581   : > { %v3151_v16 = vpop.eup %3150 }
 0x582   : > { %v1733_v20 = vmul.f32 %v3151_v16, %v1731_v3  ;;  %vm1739_vm12 = vweird.f32 %v3151_v16 }
 0x583   : > { %vm1740_vm14 = vmor %vm1738_vm13, %vm1739_vm12 }
 0x584   : > { %v1734_v5 = vmul.f32 %v3151_v16, %v1733_v20 }
 0x586   : > { %v1735_v23 = vmul.f32 0.5, %v1734_v5 }
 0x588   : > { %v1736_v24 = vsub.f32 1.5, %v1735_v23 }
 0x58a   : > { %v1737_v55 = vmul.f32 %v3151_v16, %v1736_v24 }
 0x58c   : > { %v1741_v28 = vsel %vm1740_vm14, %v3151_v16, %v1737_v55 }
 0x58d   : > { %v1742_v29 = vmul.f32 %v1741_v28, %v3954_v7  ;;  %v3034_v7 = vld [vmem:[%s4216_s5] sm:$0xff] }
 0x58e   : > { %2166 = vmatpush.bf16.msrb.mxu0 %v3034_v7 }
 0x58f   : > { %v1743_v9 = vpack.c.bf16 %v1742_v29, %v1742_v29 }
 0x591   : > { %2799 = vmatmul.msk.bf16.vlgmr.msra.gmra.mxu0 %vm590_vm0, %v1743_v9  ;;  %2800 = vmatmul.msk.bf16.vlgmr.msra.gmra.mxu1 %vm590_vm0, %v1743_v9 }
 0x592   : > { %2801 = vmatmul.msk.bf16.vlgmr.msra.gmra.mxu2 %vm590_vm0, %v1743_v9  ;;  %2802 = vmatmul.msk.bf16.vlgmr.msra.gmra.mxu3 %vm590_vm0, %v1743_v9 }
 0x60e   : > { %v1852_v22 = vpop.f32.mrf.mxu0  ;;  %v1865_v38 = vpop.f32.mrf.mxu1 }
 0x60f   : > { %v1895_v41 = vmax.f32 %v1852_v22, 0.0  ;;  %v1896_v42 = vmax.f32 %v1865_v38, 0.0 }
 0x611   : > { %v1899_v43 = vpack.c.bf16 %v1895_v41, %v1895_v41  ;;  %v1900_v44 = vpack.c.bf16 %v1896_v42, %v1896_v42 }
 0x613   : > { %2167 = vmatmul.bf16.vlgmr.msrb.gmra.mxu0 %v1899_v43  ;;  %2180 = vmatmul.bf16.vlgmr.msrb.gmra.mxu1 %v1900_v44 }
 0x615   : > { %v1878_v45 = vpop.f32.mrf.mxu2  ;;  %v1891_v47 = vpop.f32.mrf.mxu3 }
 0x616   : > { %v1897_v48 = vmax.f32 %v1878_v45, 0.0  ;;  %v1898_v49 = vmax.f32 %v1891_v47, 0.0  ;;  %v1854_v19 = vpop.f32.mrf.mxu0  ;;  %v1867_v50 = vpop.f32.mrf.mxu1 }
 0x618   : > { %v1901_v40 = vpack.c.bf16 %v1897_v48, %v1897_v48  ;;  %v1902_v46 = vpack.c.bf16 %v1898_v49, %v1898_v49 }
 0x61a   : > { %2193 = vmatmul.bf16.vlgmr.msrb.gmra.mxu2 %v1901_v40  ;;  %2206 = vmatmul.bf16.vlgmr.msrb.gmra.mxu3 %v1902_v46 }
 0x61d   : > { %v1880_v51 = vpop.f32.mrf.mxu2  ;;  %v1893_v53 = vpop.f32.mrf.mxu3 }
 0x690   : > { %v2168_v54 = vpop.f32.mrf.mxu0  ;;  %v2181_v52 = vpop.f32.mrf.mxu1 }
 0x691   : > { %v2169_v56 = vadd.f32 %v2168_v54, %v1742_v29 }
 0x693   : > { %v2182_v59 = vadd.f32 %v2181_v52, %v2169_v56 }
 0x698   : > { %v2170_v57 = vpop.f32.mrf.mxu0  ;;  %v2183_v58 = vpop.f32.mrf.mxu1 }
 0x69d   : > { %v2194_v60 = vpop.f32.mrf.mxu2  ;;  %v2207_v61 = vpop.f32.mrf.mxu3 }
 0x69e   : > { %v2195_v25 = vadd.f32 %v2194_v60, %v2182_v59 }
 0x6a0   : > { %v2208_v62 = vadd.f32 %v2207_v61, %v2195_v25 }
 0x6a2   : > { %v2211_v63 = vsel %vm590_vm0, %v2208_v62, 0.0 }
 0x6a3   : > { %2212 = vadd.xlane.f32.xlu0 %v2211_v63 }
 0x6a5   : > { %v2196_v0 = vpop.f32.mrf.mxu2  ;;  %v2209_v1 = vpop.f32.mrf.mxu3 }
 0x716   : > { %v2213_v4 = vpop.xlane.xlu0 %2212 }
 0x717   : > { %v2214_v6 = vmul.f32 %v2213_v4, %v3951_v2 }
 0x719   : > { %v2215_v3 = vsub.f32 %v2208_v62, %v2214_v6 }
 0x71b   : > { %v2216_v8 = vmul.f32 %v2215_v3, %v2215_v3 }
 0x71d   : > { %v2217_v30 = vsel %vm590_vm0, %v2216_v8, 0.0 }
 0x71e   : > { %2218 = vadd.xlane.f32.xlu2 %v2217_v30 }
 0x71f   : > { %3182 = shalt.err (!%p3179_p3)
}
 0x720   : > { %s3254_s13 = smov 128   ;;  %s3255_s16 = smov 8  }
 0x721   : > { %3068 = dma.vmem_to_hbm [thread:$0]  (%p3334_p5), %s2267_s15, 1024, %s2269_s18, %s2240_s21, %s3254_s13, %s3254_s13, %s3255_s16  }
 0x722   : > { %s2377_s0 = sshll.u32 %s3800_s19, 3  ;;  %s2933_s17 = sshll.u32 %s3317_s28, 3 }
 0x723   : > { %s2250_s23 = scalar_lea.hbm %s4217_s6, %s2933_s17  ;;  %s284_s15 = scalar_lea.vmem [#allocation3], %s2377_s0 }
 0x724   : > { %s2252_s18 = sshll.u32 %s284_s15, 4  ;;  %s2254_s21 = sshll.u32 %s2250_s23, 4  ;;  %s2253_s18 = int_to_ptr.vmem [resolvable:$true] %s2252_s18  ;;  %s2255_s21 = int_to_ptr.hbm [resolvable:$true] %s2254_s21 }
 0x725   : > { %s2235_s28 = scalar_lea.sflag [#allocation4], %s3800_s19  ;;  %s3197_s29 = sshra.s32 %s2255_s21, 4  ;;  %s3198_s29 = int_to_ptr.hbm [resolvable:$true] %s3197_s29 }
 0x726   : > { %s3199_s9 = scalar_lea.hbm %s3198_s29, 8  ;;  %s3203_s13 = scalar_lea.hbm %s4217_s6, 16 }
 0x727   : > { %p3200_p4 = scmp.ne.s32.totalorder %s3198_s29, %s3199_s9  ;;  %p3204_p9 = scmp.lt.s32.totalorder %s3198_s29, %s4217_s6 }
 0x728   : > { %p3205_p10 = scmp.lt.s32.totalorder %s3203_s13, %s3199_s9 }
 0x729   : > { %p3201_p7 = pnand %p3200_p4, %p3334_p5 }
 0x72a   : > { %p3206_p11 = por %p3205_p10, %p3204_p9 }
 0x72b   : > { %p3202_p8 = pneg %p3201_p7 }
 0x72d   : > { %p3207_p12 = pnand %p3206_p11, %p3202_p8 }
 0x791   : > { %v2219_v10 = vpop.xlane.xlu2 %2218 }
 0x792   : > { %v2220_v11 = vmul.f32 %v2219_v10, %v3951_v2 }
 0x794   : > { %v2221_v12 = vadd.f32 1e-05, %v2220_v11 }
 0x796   : > { %3152 = vrsqrt.f32 %v2221_v12  ;;  %vm2228_vm2 = vweird.f32 %v2221_v12 }
 0x79c   : > { %v3153_v13 = vpop.eup %3152 }
 0x79d   : > { %v2223_v14 = vmul.f32 %v3153_v13, %v2221_v12  ;;  %vm2229_vm15 = vweird.f32 %v3153_v13 }
 0x79e   : > { %vm2230_vm3 = vmor %vm2228_vm2, %vm2229_vm15 }
 0x79f   : > { %v2224_v15 = vmul.f32 %v3153_v13, %v2223_v14 }
 0x7a1   : > { %v2225_v16 = vmul.f32 0.5, %v2224_v15 }
 0x7a3   : > { %v2226_v17 = vsub.f32 1.5, %v2225_v16 }
 0x7a5   : > { %v2227_v18 = vmul.f32 %v3153_v13, %v2226_v17 }
 0x7a7   : > { %v2231_v2 = vsel %vm2230_vm3, %v3153_v13, %v2227_v18 }
 0x7a8   : > { %v2232_v20 = vmul.f32 %v2231_v2, %v2215_v3 }
 0x7aa   : > { %2233 = vst.msk [vmem:[%s284_s15] sm:$0xff] %vm590_vm0, %v2232_v20 }
 0x7ab   : > { %3210 = shalt.err (!%p3207_p12)
}
 0x7ac   : > { %3067 = dma.vmem_to_hbm [thread:$0]  (%p3334_p5), %s2253_s18, 128, %s2255_s21, %s2235_s28  }
 0x7ad PF: > { %p3078_p13 = scmp.ge.s32.totalorder %s3249_s27, 2  ;;  %s2283_s19 = sand.u32 1, %s3237_s24  }
 0x7ae   : > { %s2284_s17 = scalar_lea.sflag [#allocation4], %s2283_s19 }
 0x7af   : > { %p3072_p0 = pnand %p3078_p13, %p3338_p6 }
 0x7b1   : > { %p3073_p1 = pneg %p3072_p0 }
 0x7b3   : > { %3228 = dma.done.wait (%p3073_p1), %s2284_s17, 128  }
 0x7b4   : > { %3230 = vsyncadd (%p3073_p1), %s2284_s17, 4294967168  ;;  %s2294_s14 = scalar_lea.sflag [#allocation6], %s2283_s19 }
 0x7b5   : > { %3232 = dma.done.wait (%p3073_p1), %s2294_s14, 1024  }
 0x7b6   : > { %3234 = vsyncadd (%p3073_p1), %s2294_s14, 4294966272  ;;  %p21_p5 = scmp.ge.s32.totalorder %s3321_s30, 4   ;;  %s4225_s24 = smov %s3241_s25 }
 0x7b7   : > { %s4226_s25 = smov %s3245_s26  ;;  %s4227_s26 = smov %s3332_s10 }
 0x7b8   : > { %s4228_s27 = smov %s3321_s30  ;;  %23 = sbr.rel (!%p21_p5) target bundleno = 7 (0x7), region = 106 }
 0x7bd   :  { %2300 = vsyncpa [#allocation4], 1 }
 0x7be   :  { %2302 = vsyncpa [#allocation4 + $0x1], 1 }
 0x7bf   :  { %2303 = vsyncpa [#allocation6], 1 }
 0x7c0   :  { %2305 = vsyncpa [#allocation6 + $0x1], 1 }

</bundles_post_ra>
